<compile_context>
chip_gen: v7x
topology: tpu7x:2x2x1
jax: 0.10.0
libtpu: 0.0.40
codegen_flags: <defaults>
</compile_context>

<pallas_src>
import functools
import math

import jax
import jax.numpy as jnp
from jax.experimental import pallas as pl
from jax.experimental.pallas import tpu as pltpu

_LANE = 128
_SUBLANE = 8
_MAX_B_TILE = 256


def _round_up(x, m):
    return ((x + m - 1) // m) * m


# ------------------------- parameter construction ------------------------- #

def _init_linear(key, din, dout):
    kw, kb = jax.random.split(key)
    bound = 1.0 / math.sqrt(din)
    w = jax.random.uniform(kw, (din, dout), jnp.float32, -bound, bound)
    b = jax.random.uniform(kb, (dout,), jnp.float32, -bound, bound)
    return w, b


def _chunk_layout(dim_state, dim_action, units, num_layers):
    """Densenet feature chunks in concat order, each padded to 128 lanes."""
    widths = [dim_state] + [units] * num_layers + [dim_action] + [units] * num_layers
    pads = [_round_up(w, _LANE) for w in widths]
    cum = [0]
    for p in pads:
        cum.append(cum[-1] + p)
    return tuple(widths), tuple(pads), tuple(cum)


def _pack_weight(w, b, n_chunks, widths, cum, dout_pad):
    """Scatter logical weight rows to the slab's 128-aligned chunk offsets."""
    din_pad = cum[n_chunks]
    wp = jnp.zeros((din_pad, dout_pad), jnp.float32)
    row = 0
    for c in range(n_chunks):
        wd = widths[c]
        wp = wp.at[cum[c]:cum[c] + wd, :w.shape[1]].set(w[row:row + wd, :])
        row += wd
    bp = jnp.zeros((1, dout_pad), jnp.float32).at[0, :b.shape[0]].set(b)
    return wp, bp


def make_fourier_net_params(key, dim_state, dim_action, dim_discretize,
                            total_units, num_layers):
    end = int(dim_discretize * 0.5 + 1)
    units = total_units // num_layers
    widths, pads, cum = _chunk_layout(dim_state, dim_action, units, num_layers)

    logical = {"state_blocks": [], "action_blocks": []}
    packed = []  # list of (w_padded, b_padded): densenet blocks, then fused head

    # state branch (densenet blocks)
    din = dim_state
    for i in range(num_layers):
        key, sub = jax.random.split(key)
        w, b = _init_linear(sub, din, units)
        logical["state_blocks"].append((w, b))
        packed.append(_pack_weight(w, b, n_chunks=i + 1, widths=widths,
                                   cum=cum, dout_pad=pads[i + 1]))
        din += units

    # state+action branch (densenet blocks)
    din += dim_action
    for i in range(num_layers):
        key, sub = jax.random.split(key)
        w, b = _init_linear(sub, din, units)
        logical["action_blocks"].append((w, b))
        packed.append(_pack_weight(w, b, n_chunks=num_layers + 2 + i,
                                   widths=widths, cum=cum,
                                   dout_pad=pads[num_layers + 2 + i]))
        din += units

    # output heads: real + imaginary predictors fused into one lane-dense matmul
    head_out = end * dim_state
    key, k_re, k_im = jax.random.split(key, 3)
    w_re, b_re = _init_linear(k_re, din, head_out)
    w_im, b_im = _init_linear(k_im, din, head_out)
    logical["head_re"] = (w_re, b_re)
    logical["head_im"] = (w_im, b_im)
    head_pad = _round_up(2 * head_out, _LANE)
    packed.append(_pack_weight(jnp.concatenate([w_re, w_im], axis=1),
                               jnp.concatenate([b_re, b_im], axis=0),
                               n_chunks=2 * num_layers + 2, widths=widths,
                               cum=cum, dout_pad=head_pad))

    meta = dict(dim_state=dim_state, dim_action=dim_action, end=end,
                num_layers=num_layers, units=units,
                widths=widths, pads=pads, cum=cum,
                head_out=head_out, head_pad=head_pad)
    return logical, packed, meta


# ----------------------------- Pallas kernel ------------------------------ #

def _fused_kernel(states_ref, actions_ref, *refs, num_layers, pads, cum):
    """Whole FourierNet forward for one batch tile.

    refs = [w0, b0, ..., wN, bN, w_head, b_head, out_ref, slab_ref]
    slab_ref: [B_TILE, total_feat_pad] VMEM densenet-activation slab
              (every chunk is rewritten each grid step, so no stale carry-over).
    """
    n_params = 2 * (2 * num_layers + 1)
    wb = refs[:n_params]
    out_ref = refs[n_params]
    slab_ref = refs[n_params + 1]

    # seed the slab with the (zero-padded) states
    slab_ref[:, 0:pads[0]] = states_ref[...]

    # state branch densenet blocks: slab[:, chunk_k] = relu(slab[:, :cum[k]] @ W + b)
    for i in range(num_layers):
        k = i + 1
        din = cum[k]                       # 128-aligned static prefix width
        w_ref, b_ref = wb[2 * i], wb[2 * i + 1]
        y = jnp.dot(slab_ref[:, 0:din], w_ref[...],
                    preferred_element_type=jnp.float32) + b_ref[...]
        slab_ref[:, din:din + pads[k]] = jnp.maximum(y, 0.0)

    # concatenate actions (write into the next 128-aligned chunk)
    a_chunk = num_layers + 1
    slab_ref[:, cum[a_chunk]:cum[a_chunk] + pads[a_chunk]] = actions_ref[...]

    # state+action branch densenet blocks
    for i in range(num_layers):
        k = num_layers + 2 + i
        din = cum[k]
        w_ref, b_ref = wb[2 * (num_layers + i)], wb[2 * (num_layers + i) + 1]
        y = jnp.dot(slab_ref[:, 0:din], w_ref[...],
                    preferred_element_type=jnp.float32) + b_ref[...]
        slab_ref[:, din:din + pads[k]] = jnp.maximum(y, 0.0)

    # fused re|im heads: one lane-dense matmul over the full slab
    w_h, b_h = wb[-2], wb[-1]
    out_ref[...] = (jnp.dot(slab_ref[...], w_h[...],
                            preferred_element_type=jnp.float32)
                    + b_h[...]).astype(out_ref.dtype)


# ------------------------------ forward pass ------------------------------ #

def fourier_net_forward(packed, meta, states, actions):
    """Equivalent of FourierNet.forward -> (predictor_re, predictor_im)."""
    B = states.shape[0]
    num_layers = meta["num_layers"]
    pads, cum = meta["pads"], meta["cum"]
    head_pad, head_out = meta["head_pad"], meta["head_out"]
    end, dim_state = meta["end"], meta["dim_state"]
    dim_action = meta["dim_action"]
    a_chunk = num_layers + 1
    total_pad = cum[-1]

    # batch tiling: one sublane-padded tile for small batches, 256-row tiles
    # (largest comfortable VMEM tile here) for large batches -> >1 grid step
    # so "parallel" can shard across TensorCores on v7x.
    if B <= _MAX_B_TILE:
        b_tile = _round_up(B, _SUBLANE)
    else:
        b_tile = _MAX_B_TILE
    b_total = _round_up(B, b_tile)

    states_p = jnp.zeros((b_total, pads[0]), jnp.float32)
    states_p = states_p.at[:B, :dim_state].set(states.astype(jnp.float32))
    actions_p = jnp.zeros((b_total, pads[a_chunk]), jnp.float32)
    actions_p = actions_p.at[:B, :dim_action].set(actions.astype(jnp.float32))

    flat_params = []
    in_specs = [
        pl.BlockSpec((b_tile, pads[0]), lambda i: (i, 0)),
        pl.BlockSpec((b_tile, pads[a_chunk]), lambda i: (i, 0)),
    ]
    for (w, b) in packed:
        flat_params += [w, b]
        # whole-array blocks: weights stay resident in VMEM across grid steps
        in_specs.append(pl.BlockSpec(w.shape, lambda i: (0, 0)))
        in_specs.append(pl.BlockSpec(b.shape, lambda i: (0, 0)))

    kernel = functools.partial(_fused_kernel, num_layers=num_layers,
                               pads=pads, cum=cum)

    out = pl.pallas_call(
        kernel,
        out_shape=jax.ShapeDtypeStruct((b_total, head_pad), jnp.float32),
        grid_spec=pltpu.PrefetchScalarGridSpec(
            num_scalar_prefetch=0,
            grid=(b_total // b_tile,),
            in_specs=in_specs,
            out_specs=pl.BlockSpec((b_tile, head_pad), lambda i: (i, 0)),
            scratch_shapes=[pltpu.VMEM((b_tile, total_pad), jnp.float32)],
        ),
        compiler_params=pltpu.CompilerParams(
            dimension_semantics=("parallel",)),
    )(states_p, actions_p, *flat_params)

    predictor_re = out[:B, 0:head_out].reshape(B, end, dim_state)
    predictor_im = out[:B, head_out:2 * head_out].reshape(B, end, dim_state)
    return predictor_re, predictor_im


# --------------------------- pure-JAX reference ---------------------------- #

def _reference_forward(logical, meta, states, actions):
    hp = jax.lax.Precision.HIGHEST
    h = states
    for (w, b) in logical["state_blocks"]:
        h = jnp.concatenate([h, jax.nn.relu(jnp.dot(h, w, precision=hp) + b)], -1)
    h = jnp.concatenate([h, actions], -1)
    for (w, b) in logical["action_blocks"]:
        h = jnp.concatenate([h, jax.nn.relu(jnp.dot(h, w, precision=hp) + b)], -1)
    B = states.shape[0]
    w_re, b_re = logical["head_re"]
    w_im, b_im = logical["head_im"]
    re = (jnp.dot(h, w_re, precision=hp) + b_re).reshape(B, meta["end"], meta["dim_state"])
    im = (jnp.dot(h, w_im, precision=hp) + b_im).reshape(B, meta["end"], meta["dim_state"])
    return re, im


# --------------------------------- main ------------------------------------ #

if __name__ == "__main__":
    batch = 4
    dim_state = 8
    dim_action = 4
    dim_discretize = 16          # -> end = 9
    total_units = 32
    num_layers = 2

    key = jax.random.PRNGKey(0)
    k_params, k_s, k_a = jax.random.split(key, 3)

    logical, packed, meta = make_fourier_net_params(
        k_params, dim_state, dim_action, dim_discretize, total_units, num_layers)

    states = jax.random.normal(k_s, (batch, dim_state), jnp.float32)
    actions = jax.random.normal(k_a, (batch, dim_action), jnp.float32)

    pred_re, pred_im = fourier_net_forward(packed, meta, states, actions)
    jax.block_until_ready((pred_re, pred_im))

    assert pred_re.shape == (batch, meta["end"], dim_state)
    assert pred_im.shape == (batch, meta["end"], dim_state)

    # correctness vs. plain-JAX reference
    ref_re, ref_im = _reference_forward(logical, meta, states, actions)
    assert jnp.allclose(pred_re, ref_re, atol=1e-2, rtol=1e-2)
    assert jnp.allclose(pred_im, ref_im, atol=1e-2, rtol=1e-2)

    print("KERNEL_OK")
</pallas_src>

<mosaic_0001>
module attributes {stable_mosaic.version = 11 : i64} {
  func.func @_fused_kernel(%arg0: i32, %arg1: memref<8x128xf32, #tpu.memory_space<vmem>>, %arg2: memref<8x128xf32, #tpu.memory_space<vmem>>, %arg3: memref<128x128xf32, #tpu.memory_space<vmem>>, %arg4: memref<1x128xf32, #tpu.memory_space<vmem>>, %arg5: memref<256x128xf32, #tpu.memory_space<vmem>>, %arg6: memref<1x128xf32, #tpu.memory_space<vmem>>, %arg7: memref<512x128xf32, #tpu.memory_space<vmem>>, %arg8: memref<1x128xf32, #tpu.memory_space<vmem>>, %arg9: memref<640x128xf32, #tpu.memory_space<vmem>>, %arg10: memref<1x128xf32, #tpu.memory_space<vmem>>, %arg11: memref<768x256xf32, #tpu.memory_space<vmem>>, %arg12: memref<1x256xf32, #tpu.memory_space<vmem>>, %arg13: memref<8x256xf32, #tpu.memory_space<vmem>>, %arg14: memref<8x768xf32, #tpu.memory_space<vmem>>) attributes {dimension_semantics = [#tpu.dimension_semantics<parallel>], iteration_bounds = array<i64: 1>, scalar_prefetch = 0 : i64, scratch_operands = 1 : i64, tpu.core_type = #tpu.core_type<tc>, window_params = [{transform_indices = @transform_0, window_bounds = array<i64: 8, 128>}, {transform_indices = @transform_1, window_bounds = array<i64: 8, 128>}, {pipeline_mode = #tpu.pipeline_mode<synchronous>, transform_indices = @transform_2, window_bounds = array<i64: 128, 128>}, {pipeline_mode = #tpu.pipeline_mode<synchronous>, transform_indices = @transform_3, window_bounds = array<i64: 1, 128>}, {pipeline_mode = #tpu.pipeline_mode<synchronous>, transform_indices = @transform_4, window_bounds = array<i64: 256, 128>}, {pipeline_mode = #tpu.pipeline_mode<synchronous>, transform_indices = @transform_5, window_bounds = array<i64: 1, 128>}, {pipeline_mode = #tpu.pipeline_mode<synchronous>, transform_indices = @transform_6, window_bounds = array<i64: 512, 128>}, {pipeline_mode = #tpu.pipeline_mode<synchronous>, transform_indices = @transform_7, window_bounds = array<i64: 1, 128>}, {pipeline_mode = #tpu.pipeline_mode<synchronous>, transform_indices = @transform_8, window_bounds = array<i64: 640, 128>}, {pipeline_mode = #tpu.pipeline_mode<synchronous>, transform_indices = @transform_9, window_bounds = array<i64: 1, 128>}, {pipeline_mode = #tpu.pipeline_mode<synchronous>, transform_indices = @transform_10, window_bounds = array<i64: 768, 256>}, {pipeline_mode = #tpu.pipeline_mode<synchronous>, transform_indices = @transform_11, window_bounds = array<i64: 1, 256>}, {transform_indices = @transform_12, window_bounds = array<i64: 8, 256>}]} {
    %c0 = arith.constant 0 : index
    %c0_0 = arith.constant 0 : index
    %0 = vector.load %arg1[%c0, %c0_0] : memref<8x128xf32, #tpu.memory_space<vmem>>, vector<8x128xf32>
    %c0_1 = arith.constant 0 : index
    %c0_2 = arith.constant 0 : index
    %1 = vector.load %arg14[%c0_1, %c0_2] : memref<8x768xf32, #tpu.memory_space<vmem>>, vector<8x128xf32>
    tpu.vector_store %arg14[%c0_1, %c0_2], %0 {strides = array<i32>} : memref<8x768xf32, #tpu.memory_space<vmem>>, vector<8x128xf32>,
    %c0_3 = arith.constant 0 : index
    %c0_4 = arith.constant 0 : index
    %2 = vector.load %arg14[%c0_3, %c0_4] : memref<8x768xf32, #tpu.memory_space<vmem>>, vector<8x128xf32>
    %c0_5 = arith.constant 0 : index
    %c0_6 = arith.constant 0 : index
    %3 = vector.load %arg3[%c0_5, %c0_6] : memref<128x128xf32, #tpu.memory_space<vmem>>, vector<128x128xf32>
    %cst = arith.constant dense<0.000000e+00> : vector<8x128xf32>
    %4 = tpu.matmul %2, %3, %cst {dimension_numbers = #tpu.dot_dimension_numbers<[1], [0], [0], [1], [0, 0, 1, 1], [], []>} : vector<8x128xf32>, vector<128x128xf32>, vector<8x128xf32> -> vector<8x128xf32>
    %c0_7 = arith.constant 0 : index
    %c0_8 = arith.constant 0 : index
    %5 = vector.load %arg4[%c0_7, %c0_8] : memref<1x128xf32, #tpu.memory_space<vmem>>, vector<1x128xf32>
    %6 = vector.broadcast %5 : vector<1x128xf32> to vector<8x128xf32>
    %7 = arith.addf %4, %6 : vector<8x128xf32>
    %cst_9 = arith.constant 0.000000e+00 : f32
    %8 = vector.broadcast %cst_9 : f32 to vector<8x128xf32>
    %9 = arith.maximumf %7, %8 : vector<8x128xf32>
    %c0_10 = arith.constant 0 : index
    %c128 = arith.constant 128 : index
    %10 = vector.load %arg14[%c0_10, %c128] : memref<8x768xf32, #tpu.memory_space<vmem>>, vector<8x128xf32>
    tpu.vector_store %arg14[%c0_10, %c128], %9 {strides = array<i32>} : memref<8x768xf32, #tpu.memory_space<vmem>>, vector<8x128xf32>,
    %c0_11 = arith.constant 0 : index
    %c0_12 = arith.constant 0 : index
    %11 = vector.load %arg14[%c0_11, %c0_12] : memref<8x768xf32, #tpu.memory_space<vmem>>, vector<8x256xf32>
    %c0_13 = arith.constant 0 : index
    %c0_14 = arith.constant 0 : index
    %12 = vector.load %arg5[%c0_13, %c0_14] : memref<256x128xf32, #tpu.memory_space<vmem>>, vector<256x128xf32>
    %cst_15 = arith.constant dense<0.000000e+00> : vector<8x128xf32>
    %13 = tpu.matmul %11, %12, %cst_15 {dimension_numbers = #tpu.dot_dimension_numbers<[1], [0], [0], [1], [0, 0, 1, 1], [], []>} : vector<8x256xf32>, vector<256x128xf32>, vector<8x128xf32> -> vector<8x128xf32>
    %c0_16 = arith.constant 0 : index
    %c0_17 = arith.constant 0 : index
    %14 = vector.load %arg6[%c0_16, %c0_17] : memref<1x128xf32, #tpu.memory_space<vmem>>, vector<1x128xf32>
    %15 = vector.broadcast %14 : vector<1x128xf32> to vector<8x128xf32>
    %16 = arith.addf %13, %15 : vector<8x128xf32>
    %cst_18 = arith.constant 0.000000e+00 : f32
    %17 = vector.broadcast %cst_18 : f32 to vector<8x128xf32>
    %18 = arith.maximumf %16, %17 : vector<8x128xf32>
    %c0_19 = arith.constant 0 : index
    %c256 = arith.constant 256 : index
    %19 = vector.load %arg14[%c0_19, %c256] : memref<8x768xf32, #tpu.memory_space<vmem>>, vector<8x128xf32>
    tpu.vector_store %arg14[%c0_19, %c256], %18 {strides = array<i32>} : memref<8x768xf32, #tpu.memory_space<vmem>>, vector<8x128xf32>,
    %c0_20 = arith.constant 0 : index
    %c0_21 = arith.constant 0 : index
    %20 = vector.load %arg2[%c0_20, %c0_21] : memref<8x128xf32, #tpu.memory_space<vmem>>, vector<8x128xf32>
    %c0_22 = arith.constant 0 : index
    %c384 = arith.constant 384 : index
    %21 = vector.load %arg14[%c0_22, %c384] : memref<8x768xf32, #tpu.memory_space<vmem>>, vector<8x128xf32>
    tpu.vector_store %arg14[%c0_22, %c384], %20 {strides = array<i32>} : memref<8x768xf32, #tpu.memory_space<vmem>>, vector<8x128xf32>,
    %c0_23 = arith.constant 0 : index
    %c0_24 = arith.constant 0 : index
    %22 = vector.load %arg14[%c0_23, %c0_24] : memref<8x768xf32, #tpu.memory_space<vmem>>, vector<8x512xf32>
    %c0_25 = arith.constant 0 : index
    %c0_26 = arith.constant 0 : index
    %23 = vector.load %arg7[%c0_25, %c0_26] : memref<512x128xf32, #tpu.memory_space<vmem>>, vector<512x128xf32>
    %cst_27 = arith.constant dense<0.000000e+00> : vector<8x128xf32>
    %24 = tpu.matmul %22, %23, %cst_27 {dimension_numbers = #tpu.dot_dimension_numbers<[1], [0], [0], [1], [0, 0, 1, 1], [], []>} : vector<8x512xf32>, vector<512x128xf32>, vector<8x128xf32> -> vector<8x128xf32>
    %c0_28 = arith.constant 0 : index
    %c0_29 = arith.constant 0 : index
    %25 = vector.load %arg8[%c0_28, %c0_29] : memref<1x128xf32, #tpu.memory_space<vmem>>, vector<1x128xf32>
    %26 = vector.broadcast %25 : vector<1x128xf32> to vector<8x128xf32>
    %27 = arith.addf %24, %26 : vector<8x128xf32>
    %cst_30 = arith.constant 0.000000e+00 : f32
    %28 = vector.broadcast %cst_30 : f32 to vector<8x128xf32>
    %29 = arith.maximumf %27, %28 : vector<8x128xf32>
    %c0_31 = arith.constant 0 : index
    %c512 = arith.constant 512 : index
    %30 = vector.load %arg14[%c0_31, %c512] : memref<8x768xf32, #tpu.memory_space<vmem>>, vector<8x128xf32>
    tpu.vector_store %arg14[%c0_31, %c512], %29 {strides = array<i32>} : memref<8x768xf32, #tpu.memory_space<vmem>>, vector<8x128xf32>,
    %c0_32 = arith.constant 0 : index
    %c0_33 = arith.constant 0 : index
    %31 = vector.load %arg14[%c0_32, %c0_33] : memref<8x768xf32, #tpu.memory_space<vmem>>, vector<8x640xf32>
    %c0_34 = arith.constant 0 : index
    %c0_35 = arith.constant 0 : index
    %32 = vector.load %arg9[%c0_34, %c0_35] : memref<640x128xf32, #tpu.memory_space<vmem>>, vector<640x128xf32>
    %cst_36 = arith.constant dense<0.000000e+00> : vector<8x128xf32>
    %33 = tpu.matmul %31, %32, %cst_36 {dimension_numbers = #tpu.dot_dimension_numbers<[1], [0], [0], [1], [0, 0, 1, 1], [], []>} : vector<8x640xf32>, vector<640x128xf32>, vector<8x128xf32> -> vector<8x128xf32>
    %c0_37 = arith.constant 0 : index
    %c0_38 = arith.constant 0 : index
    %34 = vector.load %arg10[%c0_37, %c0_38] : memref<1x128xf32, #tpu.memory_space<vmem>>, vector<1x128xf32>
    %35 = vector.broadcast %34 : vector<1x128xf32> to vector<8x128xf32>
    %36 = arith.addf %33, %35 : vector<8x128xf32>
    %cst_39 = arith.constant 0.000000e+00 : f32
    %37 = vector.broadcast %cst_39 : f32 to vector<8x128xf32>
    %38 = arith.maximumf %36, %37 : vector<8x128xf32>
    %c0_40 = arith.constant 0 : index
    %c640 = arith.constant 640 : index
    %39 = vector.load %arg14[%c0_40, %c640] : memref<8x768xf32, #tpu.memory_space<vmem>>, vector<8x128xf32>
    tpu.vector_store %arg14[%c0_40, %c640], %38 {strides = array<i32>} : memref<8x768xf32, #tpu.memory_space<vmem>>, vector<8x128xf32>,
    %c0_41 = arith.constant 0 : index
    %c0_42 = arith.constant 0 : index
    %40 = vector.load %arg14[%c0_41, %c0_42] : memref<8x768xf32, #tpu.memory_space<vmem>>, vector<8x768xf32>
    %c0_43 = arith.constant 0 : index
    %c0_44 = arith.constant 0 : index
    %41 = vector.load %arg11[%c0_43, %c0_44] : memref<768x256xf32, #tpu.memory_space<vmem>>, vector<768x256xf32>
    %cst_45 = arith.constant dense<0.000000e+00> : vector<8x256xf32>
    %42 = tpu.matmul %40, %41, %cst_45 {dimension_numbers = #tpu.dot_dimension_numbers<[1], [0], [0], [1], [0, 0, 1, 1], [], []>} : vector<8x768xf32>, vector<768x256xf32>, vector<8x256xf32> -> vector<8x256xf32>
    %c0_46 = arith.constant 0 : index
    %c0_47 = arith.constant 0 : index
    %43 = vector.load %arg12[%c0_46, %c0_47] : memref<1x256xf32, #tpu.memory_space<vmem>>, vector<1x256xf32>
    %44 = vector.broadcast %43 : vector<1x256xf32> to vector<8x256xf32>
    %45 = arith.addf %42, %44 : vector<8x256xf32>
    %c0_48 = arith.constant 0 : index
    %c0_49 = arith.constant 0 : index
    %46 = vector.load %arg13[%c0_48, %c0_49] : memref<8x256xf32, #tpu.memory_space<vmem>>, vector<8x256xf32>
    tpu.vector_store %arg13[%c0_48, %c0_49], %45 {strides = array<i32>} : memref<8x256xf32, #tpu.memory_space<vmem>>, vector<8x256xf32>,
    return
  }
  func.func @transform_0(%arg0: i32) -> (i32, i32) {
    %c0_i32 = arith.constant 0 : i32
    %c0_i32_0 = arith.constant 0 : i32
    return %arg0, %c0_i32 : i32, i32
  }
  func.func @transform_1(%arg0: i32) -> (i32, i32) {
    %c0_i32 = arith.constant 0 : i32
    %c0_i32_0 = arith.constant 0 : i32
    return %arg0, %c0_i32 : i32, i32
  }
  func.func @transform_2(%arg0: i32) -> (i32, i32) {
    %c0_i32 = arith.constant 0 : i32
    %c0_i32_0 = arith.constant 0 : i32
    %c0_i32_1 = arith.constant 0 : i32
    return %c0_i32, %c0_i32_0 : i32, i32
  }
  func.func @transform_3(%arg0: i32) -> (i32, i32) {
    %c0_i32 = arith.constant 0 : i32
    %c0_i32_0 = arith.constant 0 : i32
    %c0_i32_1 = arith.constant 0 : i32
    return %c0_i32, %c0_i32_0 : i32, i32
  }
  func.func @transform_4(%arg0: i32) -> (i32, i32) {
    %c0_i32 = arith.constant 0 : i32
    %c0_i32_0 = arith.constant 0 : i32
    %c0_i32_1 = arith.constant 0 : i32
    return %c0_i32, %c0_i32_0 : i32, i32
  }
  func.func @transform_5(%arg0: i32) -> (i32, i32) {
    %c0_i32 = arith.constant 0 : i32
    %c0_i32_0 = arith.constant 0 : i32
    %c0_i32_1 = arith.constant 0 : i32
    return %c0_i32, %c0_i32_0 : i32, i32
  }
  func.func @transform_6(%arg0: i32) -> (i32, i32) {
    %c0_i32 = arith.constant 0 : i32
    %c0_i32_0 = arith.constant 0 : i32
    %c0_i32_1 = arith.constant 0 : i32
    return %c0_i32, %c0_i32_0 : i32, i32
  }
  func.func @transform_7(%arg0: i32) -> (i32, i32) {
    %c0_i32 = arith.constant 0 : i32
    %c0_i32_0 = arith.constant 0 : i32
    %c0_i32_1 = arith.constant 0 : i32
    return %c0_i32, %c0_i32_0 : i32, i32
  }
  func.func @transform_8(%arg0: i32) -> (i32, i32) {
    %c0_i32 = arith.constant 0 : i32
    %c0_i32_0 = arith.constant 0 : i32
    %c0_i32_1 = arith.constant 0 : i32
    return %c0_i32, %c0_i32_0 : i32, i32
  }
  func.func @transform_9(%arg0: i32) -> (i32, i32) {
    %c0_i32 = arith.constant 0 : i32
    %c0_i32_0 = arith.constant 0 : i32
    %c0_i32_1 = arith.constant 0 : i32
    return %c0_i32, %c0_i32_0 : i32, i32
  }
  func.func @transform_10(%arg0: i32) -> (i32, i32) {
    %c0_i32 = arith.constant 0 : i32
    %c0_i32_0 = arith.constant 0 : i32
    %c0_i32_1 = arith.constant 0 : i32
    return %c0_i32, %c0_i32_0 : i32, i32
  }
  func.func @transform_11(%arg0: i32) -> (i32, i32) {
    %c0_i32 = arith.constant 0 : i32
    %c0_i32_0 = arith.constant 0 : i32
    %c0_i32_1 = arith.constant 0 : i32
    return %c0_i32, %c0_i32_0 : i32, i32
  }
  func.func @transform_12(%arg0: i32) -> (i32, i32) {
    %c0_i32 = arith.constant 0 : i32
    %c0_i32_0 = arith.constant 0 : i32
    return %arg0, %c0_i32 : i32, i32
  }
}

</mosaic_0001>

<bundles_post_ra>
// kernel: tpu_custom_call.1
= control target key start
LH: loop header
LB: loop body
LE: loop exit
PB: predicated region body
PF: predicated region fallthrough
CT: control target
= control target key end

     0   :  { %17 = vsyncpa [#allocation4], 0  ;;  %s2462_s0 = inlined_call_operand.hbm [shape: f32[8,128], index: 0, kind: input, shape index: {}]   ;;  %s2463_s1 = inlined_call_operand.hbm [shape: f32[8,128], index: 1, kind: input, shape index: {}]   ;;  %s2464_s2 = inlined_call_operand.hbm [shape: f32[128,128], index: 2, kind: input, shape index: {}]   ;;  %s2465_s3 = inlined_call_operand.vmem [shape: f32[1,128], index: 3, kind: input, shape index: {}]   ;;  %s2466_s4 = inlined_call_operand.hbm [shape: f32[256,128], index: 4, kind: input, shape index: {}]   ;;  %s2467_s5 = inlined_call_operand.vmem [shape: f32[1,128], index: 5, kind: input, shape index: {}]   ;;  %s2468_s6 = inlined_call_operand.hbm [shape: f32[512,128], index: 6, kind: input, shape index: {}]   ;;  %s2469_s7 = inlined_call_operand.vmem [shape: f32[1,128], index: 7, kind: input, shape index: {}]   ;;  %s2470_s8 = inlined_call_operand.hbm [shape: f32[640,128], index: 8, kind: input, shape index: {}]   ;;  %s2471_s9 = inlined_call_operand.vmem [shape: f32[1,128], index: 9, kind: input, shape index: {}]   ;;  %s2472_s10 = inlined_call_operand.hbm [shape: f32[768,256], index: 10, kind: input, shape index: {}]   ;;  %s2473_s11 = inlined_call_operand.vmem [shape: f32[1,256], index: 11, kind: input, shape index: {}]   ;;  %s2474_s12 = inlined_call_operand.hbm [shape: f32[8,256], index: 12, kind: output, shape index: {}]  }
   0x1   :  { %18 = vsyncpa [#allocation7], 0 }
   0x2   :  { %19 = vsyncpa [#allocation10], 0 }
   0x3   :  { %20 = vsyncpa [#allocation13], 0 }
   0x4   :  { %21 = vsyncpa [#allocation5], 0  ;;  %s2201_s21 = smov [#allocation6]   ;;  %s2015_s25 = scalar_lea.hbm %s2463_s1, 128 }
   0x5   :  { %s38_s22 = sshll.u32 %s2201_s21, 4  ;;  %p2016_p0 = scmp.ne.s32.totalorder %s2463_s1, %s2015_s25  ;;  %s39_s22 = int_to_ptr.vmem [resolvable:$true] %s38_s22 }
   0x6   :  { %p2019_p1 = scmp.lt.u32.totalorder %s2015_s25, %s2463_s1 }
   0x8   :  { %p2021_p2 = pnand %p2019_p1, %p2016_p0 }
   0xa   :  { %2024 = shalt.err (!%p2021_p2)
}
   0xb   :  { %s2025_s30 = scalar_lea.vmem %s39_s22, 128  ;;  %p2030_p4 = scmp.lt.s32.totalorder %s39_s22, %s39_s22 }
   0xc   :  { %p2026_p3 = scmp.ne.s32.totalorder %s39_s22, %s2025_s30  ;;  %p2031_p5 = scmp.lt.s32.totalorder %s2025_s30, %s2025_s30 }
   0xe   :  { %p2032_p6 = por %p2031_p5, %p2030_p4 }
  0x10   :  { %p2033_p7 = pnand %p2032_p6, %p2026_p3 }
  0x12   :  { %2036 = shalt.err (!%p2033_p7)
}
  0x13   :  { %41 = dma.hbm_to_vmem [thread:$0]  %s2463_s1, 128, %s39_s22, [#allocation7]  }
  0x14   :  { %s2202_s15 = smov [#allocation9]   ;;  %s2203_s17 = smov [#allocation12]  }
  0x15   :  { %s61_s16 = sshll.u32 %s2202_s15, 4  ;;  %s89_s18 = sshll.u32 %s2203_s17, 4  ;;  %s62_s16 = int_to_ptr.vmem [resolvable:$true] %s61_s16  ;;  %s90_s18 = int_to_ptr.vmem [resolvable:$true] %s89_s18 }
  0x16   :  { %s2037_s21 = scalar_lea.hbm %s2466_s4, 4096 }
  0x17   :  { %p2038_p8 = scmp.ne.s32.totalorder %s2466_s4, %s2037_s21  ;;  %p2041_p9 = scmp.lt.u32.totalorder %s2037_s21, %s2466_s4 }
  0x19   :  { %p2043_p10 = pnand %p2041_p9, %p2038_p8 }
  0x1b   :  { %2046 = shalt.err (!%p2043_p10)
}
  0x1c   :  { %s2047_s1 = scalar_lea.vmem %s62_s16, 4096  ;;  %p2052_p12 = scmp.lt.s32.totalorder %s62_s16, %s62_s16 }
  0x1d   :  { %p2048_p11 = scmp.ne.s32.totalorder %s62_s16, %s2047_s1  ;;  %p2053_p13 = scmp.lt.s32.totalorder %s2047_s1, %s2047_s1 }
  0x1f   :  { %p2054_p0 = por %p2053_p13, %p2052_p12 }
  0x21   :  { %p2055_p1 = pnand %p2054_p0, %p2048_p11 }
  0x23   :  { %2058 = shalt.err (!%p2055_p1)
}
  0x24   :  { %s2204_s22 = smov 128   ;;  %s2205_s27 = smov 8  }
  0x25   :  { %67 = dma.hbm_to_vmem [thread:$0]  %s2466_s4, 4096, %s62_s16, [#allocation10], %s2204_s22, %s2204_s22, %s2205_s27  }
  0x26   :  { %s2059_s14 = scalar_lea.hbm %s2470_s8, 10240 }
  0x27   :  { %p2060_p2 = scmp.ne.s32.totalorder %s2470_s8, %s2059_s14  ;;  %p2063_p3 = scmp.lt.u32.totalorder %s2059_s14, %s2470_s8 }
  0x29   :  { %p2065_p4 = pnand %p2063_p3, %p2060_p2 }
  0x2b   :  { %2068 = shalt.err (!%p2065_p4)
}
  0x2c   :  { %s2069_s21 = scalar_lea.vmem %s90_s18, 10240  ;;  %p2074_p6 = scmp.lt.s32.totalorder %s90_s18, %s90_s18 }
  0x2d   :  { %p2070_p5 = scmp.ne.s32.totalorder %s90_s18, %s2069_s21  ;;  %p2075_p7 = scmp.lt.s32.totalorder %s2069_s21, %s2069_s21 }
  0x2f   :  { %p2076_p8 = por %p2075_p7, %p2074_p6 }
  0x31   :  { %p2077_p9 = pnand %p2076_p8, %p2070_p5 }
  0x33   :  { %2080 = shalt.err (!%p2077_p9)
}
  0x34   :  { %95 = dma.hbm_to_vmem [thread:$0]  %s2470_s8, 10240, %s90_s18, [#allocation13], %s2204_s22, %s2204_s22, %s2205_s27  }
  0x35   :  { %s2206_s23 = smov [#allocation3]   ;;  %s2207_s25 = smov [#allocation8]  }
  0x36   :  { %s28_s24 = sshll.u32 %s2206_s23, 4  ;;  %s47_s26 = sshll.u32 %s2207_s25, 4  ;;  %s29_s24 = int_to_ptr.vmem [resolvable:$true] %s28_s24  ;;  %s48_s26 = int_to_ptr.vmem [resolvable:$true] %s47_s26 }
  0x37   :  { %s2081_s29 = scalar_lea.hbm %s2462_s0, 128 }
  0x38   :  { %p2082_p10 = scmp.ne.s32.totalorder %s2462_s0, %s2081_s29  ;;  %p2085_p11 = scmp.lt.u32.totalorder %s2081_s29, %s2462_s0 }
  0x3a   :  { %p2087_p12 = pnand %p2085_p11, %p2082_p10 }
  0x3c   :  { %2090 = shalt.err (!%p2087_p12)
}
  0x3d   :  { %s2091_s8 = scalar_lea.vmem %s29_s24, 128  ;;  %p2096_p0 = scmp.lt.s32.totalorder %s29_s24, %s29_s24 }
  0x3e   :  { %p2092_p13 = scmp.ne.s32.totalorder %s29_s24, %s2091_s8  ;;  %p2097_p1 = scmp.lt.s32.totalorder %s2091_s8, %s2091_s8 }
  0x40   :  { %p2098_p2 = por %p2097_p1, %p2096_p0 }
  0x42   :  { %p2099_p3 = pnand %p2098_p2, %p2092_p13 }
  0x44   :  { %2102 = shalt.err (!%p2099_p3)
}
  0x45   :  { %31 = dma.hbm_to_vmem [thread:$0]  %s2462_s0, 128, %s29_s24, [#allocation4]  }
  0x46   :  { %s2103_s21 = scalar_lea.hbm %s2464_s2, 2048 }
  0x47   :  { %p2104_p4 = scmp.ne.s32.totalorder %s2464_s2, %s2103_s21  ;;  %p2107_p5 = scmp.lt.u32.totalorder %s2103_s21, %s2464_s2 }
  0x49   :  { %p2109_p6 = pnand %p2107_p5, %p2104_p4 }
  0x4b   :  { %2112 = shalt.err (!%p2109_p6)
}
  0x4c   :  { %s2113_s1 = scalar_lea.vmem %s48_s26, 2048  ;;  %p2118_p8 = scmp.lt.s32.totalorder %s48_s26, %s48_s26 }
  0x4d   :  { %p2114_p7 = scmp.ne.s32.totalorder %s48_s26, %s2113_s1  ;;  %p2119_p9 = scmp.lt.s32.totalorder %s2113_s1, %s2113_s1 }
  0x4f   :  { %p2120_p10 = por %p2119_p9, %p2118_p8 }
  0x51   :  { %p2121_p11 = pnand %p2120_p10, %p2114_p7 }
  0x53   :  { %2124 = shalt.err (!%p2121_p11)
}
  0x54   :  { %53 = dma.hbm_to_vmem [thread:$0]  %s2464_s2, 2048, %s48_s26, [#allocation7], %s2204_s22, %s2204_s22, %s2205_s27  }
  0x55   :  { %s2208_s28 = smov [#allocation11]   ;;  %s2209_s30 = smov [#allocation14]  }
  0x56   :  { %s75_s29 = sshll.u32 %s2208_s28, 4  ;;  %s103_s13 = sshll.u32 %s2209_s30, 4  ;;  %s76_s29 = int_to_ptr.vmem [resolvable:$true] %s75_s29  ;;  %s104_s13 = int_to_ptr.vmem [resolvable:$true] %s103_s13 }
  0x57   :  { %s2125_s8 = scalar_lea.hbm %s2468_s6, 8192 }
  0x58   :  { %p2126_p12 = scmp.ne.s32.totalorder %s2468_s6, %s2125_s8  ;;  %p2129_p13 = scmp.lt.u32.totalorder %s2125_s8, %s2468_s6 }
  0x5a   :  { %p2131_p0 = pnand %p2129_p13, %p2126_p12 }
  0x5c   :  { %2134 = shalt.err (!%p2131_p0)
}
  0x5d   :  { %s2135_s2 = scalar_lea.vmem %s76_s29, 8192  ;;  %p2140_p2 = scmp.lt.s32.totalorder %s76_s29, %s76_s29 }
  0x5e   :  { %p2136_p1 = scmp.ne.s32.totalorder %s76_s29, %s2135_s2  ;;  %p2141_p3 = scmp.lt.s32.totalorder %s2135_s2, %s2135_s2 }
  0x60   :  { %p2142_p4 = por %p2141_p3, %p2140_p2 }
  0x62   :  { %p2143_p5 = pnand %p2142_p4, %p2136_p1 }
  0x64   :  { %2146 = shalt.err (!%p2143_p5)
}
  0x65   :  { %81 = dma.hbm_to_vmem [thread:$0]  %s2468_s6, 8192, %s76_s29, [#allocation10], %s2204_s22, %s2204_s22, %s2205_s27  }
  0x66   :  { %s2147_s23 = scalar_lea.hbm %s2472_s10, 24576 }
  0x67   :  { %p2148_p6 = scmp.ne.s32.totalorder %s2472_s10, %s2147_s23  ;;  %p2151_p7 = scmp.lt.u32.totalorder %s2147_s23, %s2472_s10 }
  0x69   :  { %p2153_p8 = pnand %p2151_p7, %p2148_p6 }
  0x6b   :  { %2156 = shalt.err (!%p2153_p8)
}
  0x6c   :  { %s2157_s28 = scalar_lea.vmem %s104_s13, 24576  ;;  %p2162_p10 = scmp.lt.s32.totalorder %s104_s13, %s104_s13 }
  0x6d   :  { %p2158_p9 = scmp.ne.s32.totalorder %s104_s13, %s2157_s28  ;;  %p2163_p11 = scmp.lt.s32.totalorder %s2157_s28, %s2157_s28 }
  0x6f   :  { %p2164_p12 = por %p2163_p11, %p2162_p10 }
  0x71   :  { %p2165_p13 = pnand %p2164_p12, %p2158_p9 }
  0x73   :  { %2168 = shalt.err (!%p2165_p13)
}
  0x74   :  { %s2210_s6 = smov 256   ;;  %s2211_s22 = smov 16  }
  0x75   :  { %109 = dma.hbm_to_vmem [thread:$0]  %s2472_s10, 24576, %s104_s13, [#allocation13], %s2210_s6, %s2210_s6, %s2211_s22  }
  0x76   :  { %2191 = dma.done.wait [#allocation4], 128  }
  0x77   :  { %2192 = vsyncadd [#allocation4], 4294967168 }
  0x78   :  { %2193 = dma.done.wait [#allocation7], 2176  }
  0x79   :  { %2194 = vsyncadd [#allocation7], 4294965120 }
  0x7a   :  { %2195 = dma.done.wait [#allocation10], 12288  }
  0x7b   :  { %2196 = vsyncadd [#allocation10], 4294955008 }
  0x7c   :  { %2197 = dma.done.wait [#allocation13], 34816  }
  0x7d   :  { %2198 = vsyncadd [#allocation13], 4294932480  ;;  %v2212_v0 = vmov 0.0|0.0   ;;  %vm2213_vm0 = vmmov 0   ;;  %v2214_v1 = vmov 0.0   ;;  %v136_v2 = vld [vmem:[#allocation8] sm:$0xff] }
  0x7e   :  { %1593 = vmatprep.subr.bf16.mxu0 %v2212_v0  ;;  %1555 = vmatprep.mubr.msk.f32.mxu0 %vm2213_vm0, %v2214_v1  ;;  %v137_v3 = vld [vmem:[#allocation8 + $0x8] sm:$0xff]  ;;  %v138_v4 = vld [vmem:[#allocation8 + $0x10] sm:$0xff]  ;;  %v139_v6 = vld [vmem:[#allocation8 + $0x18] sm:$0xff]  ;;  %s2215_s18 = smov [#allocation15]  }
  0x7f   :  { %v1594_v5 = vpack.c.bf16 %v137_v3, %v136_v2  ;;  %v1597_v7 = vpack.c.bf16 %v139_v6, %v138_v4  ;;  %v140_v8 = vld [vmem:[#allocation8 + $0x20] sm:$0xff]  ;;  %v141_v9 = vld [vmem:[#allocation8 + $0x28] sm:$0xff]  ;;  %v142_v13 = vld [vmem:[#allocation8 + $0x30] sm:$0xff]  ;;  %s1298_s17 = sshll.u32 %s2215_s18, 4  ;;  %s1299_s17 = int_to_ptr.vmem [resolvable:$true] %s1298_s17 }
  0x80   :  { %v249_v10 = vld [vmem:[#allocation9 + $0x80] sm:$0xff]  ;;  %v250_v11 = vld [vmem:[#allocation9 + $0x88] sm:$0xff]  ;;  %v1600_v12 = vpack.c.bf16 %v141_v9, %v140_v8  ;;  %v143_v17 = vld [vmem:[#allocation8 + $0x38] sm:$0xff]  ;;  %s2169_s19 = scalar_lea.vmem %s1299_s17, 256  ;;  %p2174_p1 = scmp.lt.s32.totalorder %s1299_s17, %s1299_s17 }
  0x81   :  { %1595 = vmatpush3.bf16.msra.mxu0 %v1594_v5  ;;  %v1617_v14 = vpack.c.bf16 %v250_v11, %v249_v10  ;;  %v233_v15 = vld [vmem:[#allocation9] sm:$0xff]  ;;  %v234_v16 = vld [vmem:[#allocation9 + $0x8] sm:$0xff]  ;;  %v251_v19 = vld [vmem:[#allocation9 + $0x90] sm:$0xff]  ;;  %v1603_v24 = vpack.c.bf16 %v143_v17, %v142_v13  ;;  %p2170_p0 = scmp.ne.s32.totalorder %s1299_s17, %s2169_s19  ;;  %p2175_p2 = scmp.lt.s32.totalorder %s2169_s19, %s2169_s19 }
  0x82   :  { %1596 = vmatprep.subr.bf16.mxu0 %v2212_v0  ;;  %v1619_v18 = vpack.c.bf16 %v234_v16, %v233_v15  ;;  %v252_v20 = vld [vmem:[#allocation9 + $0x98] sm:$0xff]  ;;  %v235_v22 = vld [vmem:[#allocation9 + $0x10] sm:$0xff]  ;;  %v144_v25 = vld [vmem:[#allocation8 + $0x40] sm:$0xff] }
  0x83   :  { %1618 = vmatprep.subr.bf16.mxu1 %v1617_v14  ;;  %v1621_v21 = vpack.c.bf16 %v252_v20, %v251_v19  ;;  %v236_v23 = vld [vmem:[#allocation9 + $0x18] sm:$0xff]  ;;  %v253_v27 = vld [vmem:[#allocation9 + $0xa0] sm:$0xff]  ;;  %v254_v28 = vld [vmem:[#allocation9 + $0xa8] sm:$0xff]  ;;  %p2176_p3 = por %p2175_p2, %p2174_p1 }
  0x84   :  { %1620 = vmatpush3.bf16.msra.mxu1 %v1619_v18  ;;  %v1623_v26 = vpack.c.bf16 %v236_v23, %v235_v22  ;;  %v145_v29 = vld [vmem:[#allocation8 + $0x48] sm:$0xff]  ;;  %v1625_v30 = vpack.c.bf16 %v254_v28, %v253_v27  ;;  %v237_v31 = vld [vmem:[#allocation9 + $0x20] sm:$0xff]  ;;  %v255_v33 = vld [vmem:[#allocation9 + $0xb0] sm:$0xff] }
  0x85   :  { %1598 = vmatpush3.bf16.msra.mxu0 %v1597_v7  ;;  %1622 = vmatprep.subr.bf16.mxu1 %v1621_v21  ;;  %v238_v32 = vld [vmem:[#allocation9 + $0x28] sm:$0xff]  ;;  %v256_v35 = vld [vmem:[#allocation9 + $0xb8] sm:$0xff]  ;;  %v1606_v36 = vpack.c.bf16 %v145_v29, %v144_v25  ;;  %v146_v37 = vld [vmem:[#allocation8 + $0x50] sm:$0xff]  ;;  %p2177_p4 = pnand %p2176_p3, %p2170_p0 }
  0x86   :  { %1599 = vmatprep.subr.bf16.mxu0 %v2212_v0  ;;  %v1627_v34 = vpack.c.bf16 %v238_v32, %v237_v31  ;;  %v1629_v38 = vpack.c.bf16 %v256_v35, %v255_v33  ;;  %v239_v39 = vld [vmem:[#allocation9 + $0x30] sm:$0xff]  ;;  %v240_v40 = vld [vmem:[#allocation9 + $0x38] sm:$0xff]  ;;  %v257_v42 = vld [vmem:[#allocation9 + $0xc0] sm:$0xff] }
  0x87   :  { %v147_v41 = vld [vmem:[#allocation8 + $0x58] sm:$0xff]  ;;  %v258_v43 = vld [vmem:[#allocation9 + $0xc8] sm:$0xff]  ;;  %v1631_v44 = vpack.c.bf16 %v240_v40, %v239_v39  ;;  %v148_v46 = vld [vmem:[#allocation8 + $0x60] sm:$0xff] }
  0x88   :  { %1624 = vmatpush3.bf16.msra.mxu1 %v1623_v26  ;;  %v1609_v45 = vpack.c.bf16 %v147_v41, %v146_v37  ;;  %v1633_v47 = vpack.c.bf16 %v258_v43, %v257_v42  ;;  %v241_v48 = vld [vmem:[#allocation9 + $0x40] sm:$0xff]  ;;  %v242_v49 = vld [vmem:[#allocation9 + $0x48] sm:$0xff]  ;;  %v259_v51 = vld [vmem:[#allocation9 + $0xd0] sm:$0xff] }
  0x89   :  { %1601 = vmatpush3.bf16.msra.mxu0 %v1600_v12  ;;  %1626 = vmatprep.subr.bf16.mxu1 %v1625_v30  ;;  %v149_v50 = vld [vmem:[#allocation8 + $0x68] sm:$0xff]  ;;  %v260_v52 = vld [vmem:[#allocation9 + $0xd8] sm:$0xff]  ;;  %v1635_v53 = vpack.c.bf16 %v242_v49, %v241_v48  ;;  %v150_v55 = vld [vmem:[#allocation8 + $0x70] sm:$0xff] }
  0x8a   :  { %1602 = vmatprep.subr.bf16.mxu0 %v2212_v0  ;;  %v1612_v54 = vpack.c.bf16 %v149_v50, %v148_v46  ;;  %v1637_v56 = vpack.c.bf16 %v260_v52, %v259_v51  ;;  %v243_v57 = vld [vmem:[#allocation9 + $0x50] sm:$0xff]  ;;  %v244_v58 = vld [vmem:[#allocation9 + $0x58] sm:$0xff]  ;;  %v261_v60 = vld [vmem:[#allocation9 + $0xe0] sm:$0xff] }
  0x8b   :  { %v151_v59 = vld [vmem:[#allocation8 + $0x78] sm:$0xff]  ;;  %v262_v61 = vld [vmem:[#allocation9 + $0xe8] sm:$0xff]  ;;  %v366_v62 = vld [vmem:[#allocation11 + $0x80] sm:$0xff]  ;;  %v1639_v2 = vpack.c.bf16 %v244_v58, %v243_v57 }
  0x8c   :  { %1628 = vmatpush3.bf16.msra.mxu1 %v1627_v34  ;;  %v367_v63 = vld [vmem:[#allocation11 + $0x88] sm:$0xff]  ;;  %v1615_v3 = vpack.c.bf16 %v151_v59, %v150_v55  ;;  %v1641_v4 = vpack.c.bf16 %v262_v61, %v261_v60  ;;  %v245_v5 = vld [vmem:[#allocation9 + $0x60] sm:$0xff]  ;;  %v368_v10 = vld [vmem:[#allocation11 + $0x90] sm:$0xff] }
  0x8d   :  { %1604 = vmatpush3.bf16.msra.mxu0 %v1603_v24  ;;  %1630 = vmatprep.subr.bf16.mxu1 %v1629_v38  ;;  %v246_v6 = vld [vmem:[#allocation9 + $0x68] sm:$0xff]  ;;  %v1649_v7 = vpack.c.bf16 %v367_v63, %v366_v62  ;;  %v350_v8 = vld [vmem:[#allocation11] sm:$0xff]  ;;  %v369_v11 = vld [vmem:[#allocation11 + $0x98] sm:$0xff] }
  0x8e   :  { %1605 = vmatprep.subr.bf16.mxu0 %v2212_v0  ;;  %v351_v9 = vld [vmem:[#allocation11 + $0x8] sm:$0xff]  ;;  %v1643_v12 = vpack.c.bf16 %v246_v6, %v245_v5  ;;  %v2387_v13 = vld [vmem:[#allocation3] sm:$0xff]  ;;  %v1653_v15 = vpack.c.bf16 %v369_v11, %v368_v10  ;;  %v353_v17 = vld [vmem:[#allocation11 + $0x18] sm:$0xff] }
  0x8f   :  { %v1651_v14 = vpack.c.bf16 %v351_v9, %v350_v8  ;;  %v352_v16 = vld [vmem:[#allocation11 + $0x10] sm:$0xff]  ;;  %v370_v18 = vld [vmem:[#allocation11 + $0xa0] sm:$0xff]  ;;  %v371_v19 = vld [vmem:[#allocation11 + $0xa8] sm:$0xff] }
  0x90   :  { %1632 = vmatpush3.bf16.msra.mxu1 %v1631_v44  ;;  %v1655_v20 = vpack.c.bf16 %v353_v17, %v352_v16  ;;  %v1657_v21 = vpack.c.bf16 %v371_v19, %v370_v18  ;;  %v354_v22 = vld [vmem:[#allocation11 + $0x20] sm:$0xff]  ;;  %v355_v23 = vld [vmem:[#allocation11 + $0x28] sm:$0xff]  ;;  %v372_v24 = vld [vmem:[#allocation11 + $0xb0] sm:$0xff] }
  0x91   :  { %1607 = vmatpush3.bf16.msra.mxu0 %v1606_v36  ;;  %1634 = vmatprep.subr.bf16.mxu1 %v1633_v47  ;;  %v373_v25 = vld [vmem:[#allocation11 + $0xb8] sm:$0xff]  ;;  %v1659_v26 = vpack.c.bf16 %v355_v23, %v354_v22  ;;  %v356_v28 = vld [vmem:[#allocation11 + $0x30] sm:$0xff]  ;;  %v374_v30 = vld [vmem:[#allocation11 + $0xc0] sm:$0xff] }
  0x92   :  { %1608 = vmatprep.subr.bf16.mxu0 %v2212_v0  ;;  %v1661_v27 = vpack.c.bf16 %v373_v25, %v372_v24  ;;  %v357_v29 = vld [vmem:[#allocation11 + $0x38] sm:$0xff]  ;;  %v375_v31 = vld [vmem:[#allocation11 + $0xc8] sm:$0xff]  ;;  %v358_v34 = vld [vmem:[#allocation11 + $0x40] sm:$0xff] }
  0x93   :  { %v1663_v32 = vpack.c.bf16 %v357_v29, %v356_v28  ;;  %v1665_v33 = vpack.c.bf16 %v375_v31, %v374_v30  ;;  %v359_v35 = vld [vmem:[#allocation11 + $0x48] sm:$0xff]  ;;  %v376_v36 = vld [vmem:[#allocation11 + $0xd0] sm:$0xff]  ;;  %v377_v37 = vld [vmem:[#allocation11 + $0xd8] sm:$0xff] }
  0x94   :  { %1636 = vmatpush3.bf16.msra.mxu1 %v1635_v53  ;;  %v1667_v38 = vpack.c.bf16 %v359_v35, %v358_v34  ;;  %v1669_v39 = vpack.c.bf16 %v377_v37, %v376_v36  ;;  %v360_v40 = vld [vmem:[#allocation11 + $0x50] sm:$0xff]  ;;  %v361_v41 = vld [vmem:[#allocation11 + $0x58] sm:$0xff]  ;;  %v378_v42 = vld [vmem:[#allocation11 + $0xe0] sm:$0xff] }
  0x95   :  { %1610 = vmatpush3.bf16.msra.mxu0 %v1609_v45  ;;  %1638 = vmatprep.subr.bf16.mxu1 %v1637_v56  ;;  %v379_v43 = vld [vmem:[#allocation11 + $0xe8] sm:$0xff]  ;;  %v1671_v44 = vpack.c.bf16 %v361_v41, %v360_v40  ;;  %v362_v46 = vld [vmem:[#allocation11 + $0x60] sm:$0xff]  ;;  %v263_v49 = vld [vmem:[#allocation9 + $0xf0] sm:$0xff] }
  0x96   :  { %1611 = vmatprep.subr.bf16.mxu0 %v2212_v0  ;;  %v1673_v45 = vpack.c.bf16 %v379_v43, %v378_v42  ;;  %v363_v47 = vld [vmem:[#allocation11 + $0x68] sm:$0xff]  ;;  %v264_v50 = vld [vmem:[#allocation9 + $0xf8] sm:$0xff]  ;;  %v380_v51 = vld [vmem:[#allocation11 + $0xf0] sm:$0xff] }
  0x97   :  { %v1675_v48 = vpack.c.bf16 %v363_v47, %v362_v46  ;;  %v1645_v52 = vpack.c.bf16 %v264_v50, %v263_v49  ;;  %v381_v53 = vld [vmem:[#allocation11 + $0xf8] sm:$0xff]  ;;  %v364_v58 = vld [vmem:[#allocation11 + $0x70] sm:$0xff]  ;;  %v398_v61 = vld [vmem:[#allocation11 + $0x180] sm:$0xff] }
  0x98   :  { %1640 = vmatpush3.bf16.msra.mxu1 %v1639_v2  ;;  %v248_v55 = vld [vmem:[#allocation9 + $0x78] sm:$0xff]  ;;  %v1677_v56 = vpack.c.bf16 %v381_v53, %v380_v51  ;;  %v399_v62 = vld [vmem:[#allocation11 + $0x188] sm:$0xff]  ;;  %v1310_v2 = vld [vmem:[%s2465_s3] ss:$0 sm:$0xff] }
  0x99   :  { %1613 = vmatpush3.bf16.msra.mxu0 %v1612_v54  ;;  %1642 = vmatprep.subr.bf16.mxu1 %v1641_v4  ;;  %v247_v54 = vld [vmem:[#allocation9 + $0x70] sm:$0xff]  ;;  %v365_v59 = vld [vmem:[#allocation11 + $0x78] sm:$0xff]  ;;  %v1681_v63 = vpack.c.bf16 %v399_v62, %v398_v61  ;;  %v382_v4 = vld [vmem:[#allocation11 + $0x100] sm:$0xff] }
  0x9a   :  { %1614 = vmatprep.subr.bf16.mxu0 %v2212_v0  ;;  %v1647_v57 = vpack.c.bf16 %v248_v55, %v247_v54  ;;  %v1679_v60 = vpack.c.bf16 %v365_v59, %v364_v58  ;;  %v383_v5 = vld [vmem:[#allocation11 + $0x108] sm:$0xff]  ;;  %v400_v8 = vld [vmem:[#allocation11 + $0x190] sm:$0xff]  ;;  %v401_v9 = vld [vmem:[#allocation11 + $0x198] sm:$0xff] }
  0x9b   :  { %v1683_v11 = vpack.c.bf16 %v383_v5, %v382_v4  ;;  %v402_v16 = vld [vmem:[#allocation11 + $0x1a0] sm:$0xff]  ;;  %v403_v17 = vld [vmem:[#allocation11 + $0x1a8] sm:$0xff]  ;;  %v404_v22 = vld [vmem:[#allocation11 + $0x1b0] sm:$0xff] }
  0x9c   :  { %1644 = vmatpush3.bf16.msra.mxu1 %v1643_v12  ;;  %v1685_v12 = vpack.c.bf16 %v401_v9, %v400_v8  ;;  %v1689_v19 = vpack.c.bf16 %v403_v17, %v402_v16  ;;  %v405_v23 = vld [vmem:[#allocation11 + $0x1b8] sm:$0xff]  ;;  %v406_v28 = vld [vmem:[#allocation11 + $0x1c0] sm:$0xff]  ;;  %v407_v29 = vld [vmem:[#allocation11 + $0x1c8] sm:$0xff] }
  0x9d   :  { %1616 = vmatpush3.bf16.msra.mxu0 %v1615_v3  ;;  %1646 = vmatprep.subr.bf16.mxu1 %v1645_v52  ;;  %v1693_v25 = vpack.c.bf16 %v405_v23, %v404_v22  ;;  %v1697_v31 = vpack.c.bf16 %v407_v29, %v406_v28  ;;  %v408_v34 = vld [vmem:[#allocation11 + $0x1d0] sm:$0xff]  ;;  %v409_v35 = vld [vmem:[#allocation11 + $0x1d8] sm:$0xff]  ;;  %v410_v40 = vld [vmem:[#allocation11 + $0x1e0] sm:$0xff] }
  0x9e   :  { %1650 = vmatprep.subr.bf16.mxu0 %v1649_v7  ;;  %v1701_v37 = vpack.c.bf16 %v409_v35, %v408_v34  ;;  %v411_v41 = vld [vmem:[#allocation11 + $0x1e8] sm:$0xff]  ;;  %v412_v47 = vld [vmem:[#allocation11 + $0x1f0] sm:$0xff]  ;;  %v397_v51 = vld [vmem:[#allocation11 + $0x178] sm:$0xff] }
  0x9f   :  { %v1705_v43 = vpack.c.bf16 %v411_v41, %v410_v40  ;;  %v396_v50 = vld [vmem:[#allocation11 + $0x170] sm:$0xff]  ;;  %v584_v53 = vld [vmem:[#allocation12 + $0x80] sm:$0xff]  ;;  %v585_v54 = vld [vmem:[#allocation12 + $0x88] sm:$0xff] }
  0xa0   :  { %1556 = vmatmul.mubr.f32.vlgmr.msra.gmra.mrb[0].mxu0 %v2387_v13  ;;  %1648 = vmatpush3.bf16.msra.mxu1 %v1647_v57  ;;  %v1711_v52 = vpack.c.bf16 %v397_v51, %v396_v50  ;;  %v1713_v55 = vpack.c.bf16 %v585_v54, %v584_v53  ;;  %v569_v57 = vld [vmem:[#allocation12 + $0x8] sm:$0xff]  ;;  %v616_v59 = vld [vmem:[#allocation12 + $0x180] sm:$0xff]  ;;  %v2400_v62 = vld [vmem:[#allocation6] sm:$0xff] }
  0xa1   :  { %1652 = vmatpush3.bf16.msra.mxu0 %v1651_v14  ;;  %1682 = vmatprep.subr.bf16.mxu1 %v1681_v63  ;;  %v384_v14 = vld [vmem:[#allocation11 + $0x110] sm:$0xff]  ;;  %v571_v5 = vld [vmem:[#allocation12 + $0x18] sm:$0xff]  ;;  %v589_v8 = vld [vmem:[#allocation12 + $0xa8] sm:$0xff] }
  0xa2   :  { %1654 = vmatprep.subr.bf16.mxu0 %v1653_v15  ;;  %v385_v15 = vld [vmem:[#allocation11 + $0x118] sm:$0xff]  ;;  %v586_v63 = vld [vmem:[#allocation12 + $0x90] sm:$0xff]  ;;  %v593_v22 = vld [vmem:[#allocation12 + $0xc8] sm:$0xff] }
  0xa3   :  { %v1687_v18 = vpack.c.bf16 %v385_v15, %v384_v14  ;;  %v570_v4 = vld [vmem:[#allocation12 + $0x10] sm:$0xff]  ;;  %v591_v16 = vld [vmem:[#allocation12 + $0xb8] sm:$0xff]  ;;  %v597_v34 = vld [vmem:[#allocation12 + $0xe8] sm:$0xff] }
  0xa4   :  { %v590_v15 = vld [vmem:[#allocation12 + $0xb0] sm:$0xff]  ;;  %v595_v28 = vld [vmem:[#allocation12 + $0xd8] sm:$0xff]  ;;  %v636_v51 = vld [vmem:[#allocation12 + $0x220] sm:$0xff] }
  0xa5   :  { %1656 = vmatpush3.bf16.msra.mxu0 %v1655_v20  ;;  %v386_v20 = vld [vmem:[#allocation11 + $0x120] sm:$0xff]  ;;  %v1725_v17 = vpack.c.bf16 %v591_v16, %v590_v15  ;;  %v599_v40 = vld [vmem:[#allocation12 + $0xf8] sm:$0xff]  ;;  %v638_v54 = vld [vmem:[#allocation12 + $0x230] sm:$0xff] }
  0xa6   :  { %1658 = vmatprep.subr.bf16.mxu0 %v1657_v21  ;;  %v387_v21 = vld [vmem:[#allocation11 + $0x128] sm:$0xff] }
  0xa7   :  { %v1691_v24 = vpack.c.bf16 %v387_v21, %v386_v20  ;;  %v592_v21 = vld [vmem:[#allocation12 + $0xc0] sm:$0xff] }
  0xa8   :  { %v1729_v23 = vpack.c.bf16 %v593_v22, %v592_v21 }
  0xa9   :  { %1660 = vmatpush3.bf16.msra.mxu0 %v1659_v26  ;;  %v388_v26 = vld [vmem:[#allocation11 + $0x130] sm:$0xff] }
  0xaa   :  { %1662 = vmatprep.subr.bf16.mxu0 %v1661_v27  ;;  %v389_v27 = vld [vmem:[#allocation11 + $0x138] sm:$0xff] }
  0xab   :  { %v1695_v30 = vpack.c.bf16 %v389_v27, %v388_v26  ;;  %v594_v27 = vld [vmem:[#allocation12 + $0xd0] sm:$0xff] }
  0xac   :  { %v1733_v29 = vpack.c.bf16 %v595_v28, %v594_v27 }
  0xad   :  { %1664 = vmatpush3.bf16.msra.mxu0 %v1663_v32  ;;  %v390_v32 = vld [vmem:[#allocation11 + $0x140] sm:$0xff] }
  0xae   :  { %1666 = vmatprep.subr.bf16.mxu0 %v1665_v33  ;;  %v391_v33 = vld [vmem:[#allocation11 + $0x148] sm:$0xff] }
  0xaf   :  { %v1699_v36 = vpack.c.bf16 %v391_v33, %v390_v32  ;;  %v596_v33 = vld [vmem:[#allocation12 + $0xe0] sm:$0xff] }
  0xb0   :  { %v1737_v35 = vpack.c.bf16 %v597_v34, %v596_v33 }
  0xb1   :  { %1668 = vmatpush3.bf16.msra.mxu0 %v1667_v38  ;;  %v392_v38 = vld [vmem:[#allocation11 + $0x150] sm:$0xff] }
  0xb2   :  { %1670 = vmatprep.subr.bf16.mxu0 %v1669_v39  ;;  %v393_v39 = vld [vmem:[#allocation11 + $0x158] sm:$0xff] }
  0xb3   :  { %v1703_v42 = vpack.c.bf16 %v393_v39, %v392_v38  ;;  %v598_v39 = vld [vmem:[#allocation12 + $0xf0] sm:$0xff] }
  0xb4   :  { %v1741_v41 = vpack.c.bf16 %v599_v40, %v598_v39 }
  0xb5   :  { %1672 = vmatpush3.bf16.msra.mxu0 %v1671_v44  ;;  %v394_v44 = vld [vmem:[#allocation11 + $0x160] sm:$0xff] }
  0xb6   :  { %1674 = vmatprep.subr.bf16.mxu0 %v1673_v45  ;;  %v395_v45 = vld [vmem:[#allocation11 + $0x168] sm:$0xff] }
  0xb7   :  { %v1707_v46 = vpack.c.bf16 %v395_v45, %v394_v44  ;;  %v632_v45 = vld [vmem:[#allocation12 + $0x200] sm:$0xff] }
  0xb9   :  { %1676 = vmatpush3.bf16.msra.mxu0 %v1675_v48  ;;  %v413_v48 = vld [vmem:[#allocation11 + $0x1f8] sm:$0xff] }
  0xba   :  { %1678 = vmatprep.subr.bf16.mxu0 %v1677_v56  ;;  %v1709_v49 = vpack.c.bf16 %v413_v48, %v412_v47  ;;  %v568_v56 = vld [vmem:[#allocation12] sm:$0xff]  ;;  %v634_v47 = vld [vmem:[#allocation12 + $0x210] sm:$0xff] }
  0xbb   :  { %v1715_v58 = vpack.c.bf16 %v569_v57, %v568_v56  ;;  %v641_v56 = vld [vmem:[#allocation12 + $0x248] sm:$0xff] }
  0xbd   :  { %1680 = vmatpush3.bf16.msra.mxu0 %v1679_v60  ;;  %v617_v60 = vld [vmem:[#allocation12 + $0x188] sm:$0xff] }
  0xbe   :  { %1714 = vmatprep.subr.bf16.mxu0 %v1713_v55  ;;  %v1745_v61 = vpack.c.bf16 %v617_v60, %v616_v59  ;;  %v643_v59 = vld [vmem:[#allocation12 + $0x258] sm:$0xff] }
 0x173   :  { %v225_v3 = vpop.f32.mrb[0].mxu0 }
 0x174   :  { %v226_v6 = vadd.f32 %v1310_v2, %v225_v3  ;;  %v1557_v7 = vpop.f32.mrb[1].mxu0  ;;  %v587_v2 = vld [vmem:[#allocation12 + $0x98] sm:$0xff] }
 0x175   :  { %v1717_v3 = vpack.c.bf16 %v587_v2, %v586_v63  ;;  %v588_v7 = vld [vmem:[#allocation12 + $0xa0] sm:$0xff]  ;;  %v1311_v2 = vld [vmem:[%s2467_s5] ss:$0 sm:$0xff] }
 0x176   :  { %v2393_v10 = vmax.f32 %v226_v6, 0.0  ;;  %v1719_v6 = vpack.c.bf16 %v571_v5, %v570_v4  ;;  %v1721_v9 = vpack.c.bf16 %v589_v8, %v588_v7  ;;  %v601_v7 = vld [vmem:[#allocation12 + $0x108] sm:$0xff] }
 0x178   :  { %336 = vmatprep.mubr.f32.mxu1 %v2393_v10  ;;  %485 = vmatprep.mubr.f32.mxu0 %v2393_v10 }
 0x179   :  { %337 = vmatmul.mubr.f32.vlgmr.msra.gmra.mrb[0].mxu1 %v2387_v13  ;;  %486 = vmatmul.mubr.f32.vlgmr.msra.gmra.mrb[2].mxu0 %v2387_v13 }
 0x17a   :  { %719 = vmatprep.mubr.f32.mxu0 %v2393_v10  ;;  %1684 = vmatpush3.bf16.msra.mxu1 %v1683_v11  ;;  %v572_v11 = vld [vmem:[#allocation12 + $0x20] sm:$0xff] }
 0x17b   :  { %1686 = vmatprep.subr.bf16.mxu1 %v1685_v12  ;;  %1716 = vmatpush3.bf16.msra.mxu0 %v1715_v58  ;;  %v573_v12 = vld [vmem:[#allocation12 + $0x28] sm:$0xff]  ;;  %v642_v58 = vld [vmem:[#allocation12 + $0x250] sm:$0xff] }
 0x17c   :  { %555 = vmatprep.mubr.f32.mxu1 %v2400_v62  ;;  %1718 = vmatprep.subr.bf16.mxu0 %v1717_v3  ;;  %v1723_v14 = vpack.c.bf16 %v573_v12, %v572_v11  ;;  %v1793_v60 = vpack.c.bf16 %v643_v59, %v642_v58  ;;  %v619_v11 = vld [vmem:[#allocation12 + $0x198] sm:$0xff]  ;;  %v939_v58 = vld [vmem:[#allocation14 + $0x210] sm:$0xff]  ;;  %v942_v59 = vld [vmem:[#allocation14 + $0x228] sm:$0xff] }
 0x17e   :  { %1688 = vmatpush3.bf16.msra.mxu1 %v1687_v18  ;;  %v574_v18 = vld [vmem:[#allocation12 + $0x30] sm:$0xff] }
 0x17f   :  { %1690 = vmatprep.subr.bf16.mxu1 %v1689_v19  ;;  %1720 = vmatpush3.bf16.msra.mxu0 %v1719_v6  ;;  %v575_v19 = vld [vmem:[#allocation12 + $0x38] sm:$0xff]  ;;  %v600_v6 = vld [vmem:[#allocation12 + $0x100] sm:$0xff] }
 0x180   :  { %1722 = vmatprep.subr.bf16.mxu0 %v1721_v9  ;;  %v1727_v20 = vpack.c.bf16 %v575_v19, %v574_v18  ;;  %v618_v9 = vld [vmem:[#allocation12 + $0x190] sm:$0xff]  ;;  %v603_v18 = vld [vmem:[#allocation12 + $0x118] sm:$0xff]  ;;  %v620_v19 = vld [vmem:[#allocation12 + $0x1a0] sm:$0xff] }
 0x181   :  { %v1749_v16 = vpack.c.bf16 %v619_v11, %v618_v9  ;;  %v945_v9 = vld [vmem:[#allocation14 + $0x240] sm:$0xff]  ;;  %v947_v11 = vld [vmem:[#allocation14 + $0x250] sm:$0xff] }
 0x182   :  { %1692 = vmatpush3.bf16.msra.mxu1 %v1691_v24  ;;  %v576_v24 = vld [vmem:[#allocation12 + $0x40] sm:$0xff] }
 0x183   :  { %1694 = vmatprep.subr.bf16.mxu1 %v1693_v25  ;;  %1724 = vmatpush3.bf16.msra.mxu0 %v1723_v14  ;;  %v577_v25 = vld [vmem:[#allocation12 + $0x48] sm:$0xff]  ;;  %v1747_v14 = vpack.c.bf16 %v601_v7, %v600_v6 }
 0x184   :  { %1726 = vmatprep.subr.bf16.mxu0 %v1725_v17  ;;  %v1731_v26 = vpack.c.bf16 %v577_v25, %v576_v24  ;;  %v602_v17 = vld [vmem:[#allocation12 + $0x110] sm:$0xff]  ;;  %v605_v24 = vld [vmem:[#allocation12 + $0x128] sm:$0xff] }
 0x185   :  { %v1751_v21 = vpack.c.bf16 %v603_v18, %v602_v17  ;;  %v622_v25 = vld [vmem:[#allocation12 + $0x1b0] sm:$0xff]  ;;  %v949_v18 = vld [vmem:[#allocation14 + $0x260] sm:$0xff] }
 0x186   :  { %1696 = vmatpush3.bf16.msra.mxu1 %v1695_v30  ;;  %v578_v30 = vld [vmem:[#allocation12 + $0x50] sm:$0xff] }
 0x187   :  { %1698 = vmatprep.subr.bf16.mxu1 %v1697_v31  ;;  %1728 = vmatpush3.bf16.msra.mxu0 %v1727_v20  ;;  %v579_v31 = vld [vmem:[#allocation12 + $0x58] sm:$0xff]  ;;  %v621_v20 = vld [vmem:[#allocation12 + $0x1a8] sm:$0xff] }
 0x188   :  { %1730 = vmatprep.subr.bf16.mxu0 %v1729_v23  ;;  %v1735_v32 = vpack.c.bf16 %v579_v31, %v578_v30  ;;  %v1753_v22 = vpack.c.bf16 %v621_v20, %v620_v19  ;;  %v604_v23 = vld [vmem:[#allocation12 + $0x120] sm:$0xff]  ;;  %v607_v30 = vld [vmem:[#allocation12 + $0x138] sm:$0xff]  ;;  %v951_v19 = vld [vmem:[#allocation14 + $0x270] sm:$0xff] }
 0x189   :  { %v1755_v27 = vpack.c.bf16 %v605_v24, %v604_v23  ;;  %v624_v31 = vld [vmem:[#allocation12 + $0x1c0] sm:$0xff]  ;;  %v954_v20 = vld [vmem:[#allocation14 + $0x288] sm:$0xff] }
 0x18a   :  { %1700 = vmatpush3.bf16.msra.mxu1 %v1699_v36  ;;  %v580_v36 = vld [vmem:[#allocation12 + $0x60] sm:$0xff] }
 0x18b   :  { %1702 = vmatprep.subr.bf16.mxu1 %v1701_v37  ;;  %1732 = vmatpush3.bf16.msra.mxu0 %v1731_v26  ;;  %v581_v37 = vld [vmem:[#allocation12 + $0x68] sm:$0xff]  ;;  %v623_v26 = vld [vmem:[#allocation12 + $0x1b8] sm:$0xff]  ;;  %v953_v24 = vld [vmem:[#allocation14 + $0x280] sm:$0xff] }
 0x18c   :  { %1734 = vmatprep.subr.bf16.mxu0 %v1733_v29  ;;  %v1739_v38 = vpack.c.bf16 %v581_v37, %v580_v36  ;;  %v1757_v28 = vpack.c.bf16 %v623_v26, %v622_v25  ;;  %v606_v29 = vld [vmem:[#allocation12 + $0x130] sm:$0xff]  ;;  %v609_v36 = vld [vmem:[#allocation12 + $0x148] sm:$0xff]  ;;  %v960_v26 = vld [vmem:[#allocation14 + $0x2b8] sm:$0xff] }
 0x18d   :  { %v1759_v33 = vpack.c.bf16 %v607_v30, %v606_v29  ;;  %v626_v37 = vld [vmem:[#allocation12 + $0x1d0] sm:$0xff]  ;;  %v958_v25 = vld [vmem:[#allocation14 + $0x2a8] sm:$0xff]  ;;  %v957_v29 = vld [vmem:[#allocation14 + $0x2a0] sm:$0xff] }
 0x18e   :  { %1704 = vmatpush3.bf16.msra.mxu1 %v1703_v42  ;;  %v582_v42 = vld [vmem:[#allocation12 + $0x70] sm:$0xff] }
 0x18f   :  { %1706 = vmatprep.subr.bf16.mxu1 %v1705_v43  ;;  %1736 = vmatpush3.bf16.msra.mxu0 %v1735_v32  ;;  %v583_v43 = vld [vmem:[#allocation12 + $0x78] sm:$0xff]  ;;  %v625_v32 = vld [vmem:[#allocation12 + $0x1c8] sm:$0xff]  ;;  %v959_v30 = vld [vmem:[#allocation14 + $0x2b0] sm:$0xff] }
 0x190   :  { %1738 = vmatprep.subr.bf16.mxu0 %v1737_v35  ;;  %v1743_v44 = vpack.c.bf16 %v583_v43, %v582_v42  ;;  %v1761_v34 = vpack.c.bf16 %v625_v32, %v624_v31  ;;  %v608_v35 = vld [vmem:[#allocation12 + $0x140] sm:$0xff]  ;;  %v611_v42 = vld [vmem:[#allocation12 + $0x158] sm:$0xff]  ;;  %v962_v31 = vld [vmem:[#allocation14 + $0x2c8] sm:$0xff] }
 0x191   :  { %v1763_v39 = vpack.c.bf16 %v609_v36, %v608_v35  ;;  %v628_v43 = vld [vmem:[#allocation12 + $0x1e0] sm:$0xff]  ;;  %v964_v32 = vld [vmem:[#allocation14 + $0x2d8] sm:$0xff]  ;;  %v963_v36 = vld [vmem:[#allocation14 + $0x2d0] sm:$0xff] }
 0x192   :  { %1708 = vmatpush3.bf16.msra.mxu1 %v1707_v46  ;;  %v633_v46 = vld [vmem:[#allocation12 + $0x208] sm:$0xff]  ;;  %v961_v35 = vld [vmem:[#allocation14 + $0x2c0] sm:$0xff] }
 0x193   :  { %1710 = vmatprep.subr.bf16.mxu1 %v1709_v49  ;;  %1740 = vmatpush3.bf16.msra.mxu0 %v1739_v38  ;;  %v1778_v48 = vpack.c.bf16 %v633_v46, %v632_v45  ;;  %v635_v49 = vld [vmem:[#allocation12 + $0x218] sm:$0xff] }
 0x194   :  { %1742 = vmatprep.subr.bf16.mxu0 %v1741_v41  ;;  %v1781_v50 = vpack.c.bf16 %v635_v49, %v634_v47  ;;  %v627_v38 = vld [vmem:[#allocation12 + $0x1d8] sm:$0xff]  ;;  %v610_v41 = vld [vmem:[#allocation12 + $0x150] sm:$0xff]  ;;  %v612_v47 = vld [vmem:[#allocation12 + $0x160] sm:$0xff] }
 0x195   :  { %v1765_v40 = vpack.c.bf16 %v627_v38, %v626_v37  ;;  %v1767_v45 = vpack.c.bf16 %v611_v42, %v610_v41  ;;  %v630_v49 = vld [vmem:[#allocation12 + $0x1f0] sm:$0xff]  ;;  %v966_v37 = vld [vmem:[#allocation14 + $0x2e8] sm:$0xff]  ;;  %v968_v38 = vld [vmem:[#allocation14 + $0x2f8] sm:$0xff] }
 0x196   :  { %1712 = vmatpush3.bf16.msra.mxu1 %v1711_v52  ;;  %v637_v52 = vld [vmem:[#allocation12 + $0x228] sm:$0xff]  ;;  %v965_v41 = vld [vmem:[#allocation14 + $0x2e0] sm:$0xff]  ;;  %v967_v42 = vld [vmem:[#allocation14 + $0x2f0] sm:$0xff] }
 0x197   :  { %1746 = vmatprep.subr.bf16.mxu1 %v1745_v61  ;;  %1744 = vmatpush3.bf16.msra.mxu0 %v1743_v44  ;;  %v1784_v53 = vpack.c.bf16 %v637_v52, %v636_v51  ;;  %v629_v44 = vld [vmem:[#allocation12 + $0x1e8] sm:$0xff] }
 0x198   :  { %1777 = vmatprep.subr.bf16.mxu0 %v2212_v0  ;;  %v1769_v46 = vpack.c.bf16 %v629_v44, %v628_v43  ;;  %v970_v43 = vld [vmem:[#allocation14 + $0x308] sm:$0xff]  ;;  %v972_v44 = vld [vmem:[#allocation14 + $0x318] sm:$0xff] }
 0x19a   :  { %720 = vmatmul.mubr.f32.vlgmr.msra.gmra.mrb[4].mxu0 %v2387_v13  ;;  %v639_v13 = vld [vmem:[#allocation12 + $0x238] sm:$0xff] }
 0x19b   :  { %1590 = vmatprep.mubr.msk.f32.mxu0 %vm2213_vm0, %v2214_v1  ;;  %1779 = vmatpush3.bf16.msra.mxu0 %v1778_v48  ;;  %v1787_v55 = vpack.c.bf16 %v639_v13, %v638_v54  ;;  %v640_v1 = vld [vmem:[#allocation12 + $0x240] sm:$0xff]  ;;  %v613_v48 = vld [vmem:[#allocation12 + $0x168] sm:$0xff]  ;;  %v615_v54 = vld [vmem:[#allocation12 + $0x178] sm:$0xff] }
 0x19c   :  { %1780 = vmatprep.subr.bf16.mxu0 %v2212_v0  ;;  %v1790_v57 = vpack.c.bf16 %v641_v56, %v640_v1  ;;  %v1771_v51 = vpack.c.bf16 %v613_v48, %v612_v47  ;;  %v938_v13 = vld [vmem:[#allocation14 + $0x208] sm:$0xff]  ;;  %v969_v47 = vld [vmem:[#allocation14 + $0x300] sm:$0xff]  ;;  %v971_v48 = vld [vmem:[#allocation14 + $0x310] sm:$0xff] }
 0x19f   :  { %1782 = vmatpush3.bf16.msra.mxu0 %v1781_v50  ;;  %v631_v50 = vld [vmem:[#allocation12 + $0x1f8] sm:$0xff] }
 0x1a0   :  { %1783 = vmatprep.subr.bf16.mxu0 %v2212_v0  ;;  %v1773_v52 = vpack.c.bf16 %v631_v50, %v630_v49  ;;  %v974_v49 = vld [vmem:[#allocation14 + $0x328] sm:$0xff]  ;;  %v976_v50 = vld [vmem:[#allocation14 + $0x338] sm:$0xff] }
 0x1a3   :  { %1785 = vmatpush3.bf16.msra.mxu0 %v1784_v53  ;;  %v614_v53 = vld [vmem:[#allocation12 + $0x170] sm:$0xff] }
 0x1a4   :  { %1786 = vmatprep.subr.bf16.mxu0 %v2212_v0  ;;  %v1775_v1 = vpack.c.bf16 %v615_v54, %v614_v53  ;;  %v973_v53 = vld [vmem:[#allocation14 + $0x320] sm:$0xff]  ;;  %v975_v54 = vld [vmem:[#allocation14 + $0x330] sm:$0xff] }
 0x1a7   :  { %1788 = vmatpush3.bf16.msra.mxu0 %v1787_v55  ;;  %v940_v55 = vld [vmem:[#allocation14 + $0x218] sm:$0xff] }
 0x1a8   :  { %1789 = vmatprep.subr.bf16.mxu0 %v2212_v0  ;;  %v1865_v56 = vpack.c.bf16 %v940_v55, %v938_v13  ;;  %v978_v13 = vld [vmem:[#allocation14 + $0x348] sm:$0xff]  ;;  %v980_v55 = vld [vmem:[#allocation14 + $0x358] sm:$0xff] }
 0x1ab   :  { %1791 = vmatpush3.bf16.msra.mxu0 %v1790_v57  ;;  %v937_v57 = vld [vmem:[#allocation14 + $0x200] sm:$0xff] }
 0x1ac   :  { %1792 = vmatprep.subr.bf16.mxu0 %v2212_v0 }
 0x1af   :  { %1794 = vmatpush3.bf16.msra.mxu0 %v1793_v60  ;;  %v944_v60 = vld [vmem:[#allocation14 + $0x238] sm:$0xff] }
 0x1b0   :  { %1795 = vmatprep.subr.bf16.mxu0 %v2212_v0 }
 0x24c   :  { %v1363_v61 = vpop.f32.mrb[0].mxu1  ;;  %v1398_v63 = vpop.f32.mrb[2].mxu0 }
 0x24d   :  { %v1364_v3 = vpop.f32.mrb[1].mxu1  ;;  %v1399_v4 = vpop.f32.mrb[3].mxu0 }
 0x24e   :  { %v1365_v5 = vadd.f32 %v1364_v3, %v1363_v61  ;;  %v2416_v8 = vadd.f32 %v1399_v4, %v1398_v63  ;;  %v1867_v61 = vpack.c.bf16 %v939_v58, %v937_v57  ;;  %v1869_v63 = vpack.c.bf16 %v944_v60, %v942_v59  ;;  %v943_v3 = vld [vmem:[#allocation14 + $0x230] sm:$0xff]  ;;  %v946_v4 = vld [vmem:[#allocation14 + $0x248] sm:$0xff]  ;;  %v977_v57 = vld [vmem:[#allocation14 + $0x340] sm:$0xff] }
 0x24f   :  { %v979_v58 = vld [vmem:[#allocation14 + $0x350] sm:$0xff]  ;;  %v982_v59 = vld [vmem:[#allocation14 + $0x368] sm:$0xff]  ;;  %v984_v60 = vld [vmem:[#allocation14 + $0x378] sm:$0xff] }
 0x250   :  { %v339_v12 = vadd.f32 %v1365_v5, %v1311_v2  ;;  %v941_v2 = vld [vmem:[#allocation14 + $0x220] sm:$0xff]  ;;  %v948_v5 = vld [vmem:[#allocation14 + $0x258] sm:$0xff] }
 0x251   :  { %v1871_v6 = vpack.c.bf16 %v943_v3, %v941_v2  ;;  %v1873_v7 = vpack.c.bf16 %v948_v5, %v946_v4  ;;  %v981_v2 = vld [vmem:[#allocation14 + $0x360] sm:$0xff]  ;;  %v983_v3 = vld [vmem:[#allocation14 + $0x370] sm:$0xff]  ;;  %v986_v4 = vld [vmem:[#allocation14 + $0x388] sm:$0xff] }
 0x252   :  { %v2418_v15 = vmax.f32 %v339_v12, 0.0  ;;  %v950_v12 = vld [vmem:[#allocation14 + $0x268] sm:$0xff]  ;;  %v988_v5 = vld [vmem:[#allocation14 + $0x398] sm:$0xff] }
 0x254   :  { %556 = vmatmul.mubr.f32.vlgmr.msra.gmra.mrb[2].mxu1 %v2418_v15 }
 0x255   :  { %1748 = vmatpush3.bf16.msra.mxu1 %v1747_v14  ;;  %789 = vmatprep.mubr.f32.mxu1 %v2400_v62  ;;  %v952_v14 = vld [vmem:[#allocation14 + $0x278] sm:$0xff] }
 0x256   :  { %1750 = vmatprep.subr.bf16.mxu1 %v1749_v16  ;;  %v1875_v16 = vpack.c.bf16 %v947_v11, %v945_v9  ;;  %v1877_v17 = vpack.c.bf16 %v952_v14, %v950_v12  ;;  %v985_v9 = vld [vmem:[#allocation14 + $0x380] sm:$0xff]  ;;  %v987_v11 = vld [vmem:[#allocation14 + $0x390] sm:$0xff]  ;;  %v990_v12 = vld [vmem:[#allocation14 + $0x3a8] sm:$0xff] }
 0x257   :  { %v992_v14 = vld [vmem:[#allocation14 + $0x3b8] sm:$0xff] }
 0x259   :  { %1752 = vmatpush3.bf16.msra.mxu1 %v1751_v21  ;;  %v956_v21 = vld [vmem:[#allocation14 + $0x298] sm:$0xff] }
 0x25a   :  { %1754 = vmatprep.subr.bf16.mxu1 %v1753_v22  ;;  %v1879_v22 = vpack.c.bf16 %v951_v19, %v949_v18  ;;  %v1881_v23 = vpack.c.bf16 %v956_v21, %v954_v20  ;;  %v989_v18 = vld [vmem:[#allocation14 + $0x3a0] sm:$0xff]  ;;  %v991_v19 = vld [vmem:[#allocation14 + $0x3b0] sm:$0xff]  ;;  %v994_v20 = vld [vmem:[#allocation14 + $0x3c8] sm:$0xff] }
 0x25b   :  { %v996_v21 = vld [vmem:[#allocation14 + $0x3d8] sm:$0xff] }
 0x25d   :  { %1756 = vmatpush3.bf16.msra.mxu1 %v1755_v27 }
 0x25e   :  { %1758 = vmatprep.subr.bf16.mxu1 %v1757_v28  ;;  %v1885_v28 = vpack.c.bf16 %v960_v26, %v958_v25  ;;  %v644_v25 = vld [vmem:[#allocation12 + $0x260] sm:$0xff]  ;;  %v645_v26 = vld [vmem:[#allocation12 + $0x268] sm:$0xff] }
 0x261   :  { %1760 = vmatpush3.bf16.msra.mxu1 %v1759_v33  ;;  %v1887_v33 = vpack.c.bf16 %v959_v30, %v957_v29  ;;  %v1796_v29 = vpack.c.bf16 %v645_v26, %v644_v25 }
 0x262   :  { %1762 = vmatprep.subr.bf16.mxu1 %v1761_v34  ;;  %v1889_v34 = vpack.c.bf16 %v964_v32, %v962_v31  ;;  %v997_v31 = vld [vmem:[#allocation14 + $0x3e0] sm:$0xff] }
 0x263   :  { %1797 = vmatpush3.bf16.msra.mxu0 %v1796_v29  ;;  %v1034_v29 = vld [vmem:[#allocation14 + $0x508] sm:$0xff] }
 0x264   :  { %1798 = vmatprep.subr.bf16.mxu0 %v2212_v0 }
 0x265   :  { %1764 = vmatpush3.bf16.msra.mxu1 %v1763_v39  ;;  %v1891_v39 = vpack.c.bf16 %v963_v36, %v961_v35  ;;  %v647_v35 = vld [vmem:[#allocation12 + $0x278] sm:$0xff] }
 0x266   :  { %1766 = vmatprep.subr.bf16.mxu1 %v1765_v40  ;;  %v1893_v40 = vpack.c.bf16 %v968_v38, %v966_v37 }
 0x269   :  { %1768 = vmatpush3.bf16.msra.mxu1 %v1767_v45  ;;  %v1895_v45 = vpack.c.bf16 %v967_v42, %v965_v41  ;;  %v874_v41 = vld [vmem:[#allocation14 + $0x8] sm:$0xff]  ;;  %v876_v42 = vld [vmem:[#allocation14 + $0x18] sm:$0xff] }
 0x26a   :  { %1770 = vmatprep.subr.bf16.mxu1 %v1769_v46  ;;  %v1897_v46 = vpack.c.bf16 %v972_v44, %v970_v43  ;;  %v1801_v43 = vpack.c.bf16 %v876_v42, %v874_v41  ;;  %v1002_v44 = vld [vmem:[#allocation14 + $0x408] sm:$0xff]  ;;  %v1039_v41 = vld [vmem:[#allocation14 + $0x530] sm:$0xff] }
 0x26b   :  { %v1042_v42 = vld [vmem:[#allocation14 + $0x548] sm:$0xff] }
 0x26d   :  { %1772 = vmatpush3.bf16.msra.mxu1 %v1771_v51  ;;  %v1899_v51 = vpack.c.bf16 %v971_v48, %v969_v47  ;;  %v1468_v38 = vpop.f32.mrb[4].mxu0  ;;  %v1003_v47 = vld [vmem:[#allocation14 + $0x410] sm:$0xff] }
 0x26e   :  { %1774 = vmatprep.subr.bf16.mxu1 %v1773_v52  ;;  %v1901_v52 = vpack.c.bf16 %v976_v50, %v974_v49  ;;  %v1006_v49 = vld [vmem:[#allocation14 + $0x428] sm:$0xff]  ;;  %v1008_v50 = vld [vmem:[#allocation14 + $0x438] sm:$0xff] }
 0x271   :  { %1776 = vmatpush3.bf16.msra.mxu1 %v1775_v1  ;;  %v1903_v1 = vpack.c.bf16 %v975_v54, %v973_v53  ;;  %v1010_v54 = vld [vmem:[#allocation14 + $0x448] sm:$0xff] }
 0x272   :  { %1866 = vmatprep.subr.bf16.mxu1 %v1865_v56  ;;  %v1905_v56 = vpack.c.bf16 %v980_v55, %v978_v13  ;;  %v1012_v13 = vld [vmem:[#allocation14 + $0x458] sm:$0xff] }
 0x273   :  { %v1937_v55 = vpack.c.bf16 %v1012_v13, %v1010_v54 }
 0x274   :  { %790 = vmatmul.mubr.f32.vlgmr.msra.gmra.mrb[4].mxu1 %v2418_v15 }
 0x275   :  { %1868 = vmatpush1.bf16.msra.mxu1 %v1867_v61  ;;  %1212 = vmatprep.mubr.f32.mxu1 %v2400_v62  ;;  %v955_v62 = vld [vmem:[#allocation14 + $0x290] sm:$0xff]  ;;  %v1907_v61 = vpack.c.bf16 %v979_v58, %v977_v57  ;;  %v1014_v57 = vld [vmem:[#allocation14 + $0x468] sm:$0xff]  ;;  %v1016_v58 = vld [vmem:[#allocation14 + $0x478] sm:$0xff] }
 0x276   :  { %1870 = vmatprep.subr.bf16.mxu1 %v1869_v63  ;;  %v1883_v27 = vpack.c.bf16 %v955_v62, %v953_v24  ;;  %v1909_v63 = vpack.c.bf16 %v984_v60, %v982_v59  ;;  %v1921_v24 = vpack.c.bf16 %v996_v21, %v994_v20  ;;  %v995_v62 = vld [vmem:[#allocation14 + $0x3d0] sm:$0xff]  ;;  %v1941_v60 = vpack.c.bf16 %v1016_v58, %v1014_v57  ;;  %v1056_v57 = vld [vmem:[#allocation14 + $0x5b8] sm:$0xff] }
 0x279   :  { %1872 = vmatpush1.bf16.msra.mxu1 %v1871_v6  ;;  %v1911_v6 = vpack.c.bf16 %v983_v3, %v981_v2  ;;  %v1018_v2 = vld [vmem:[#allocation14 + $0x488] sm:$0xff]  ;;  %v1020_v3 = vld [vmem:[#allocation14 + $0x498] sm:$0xff] }
 0x27a   :  { %1874 = vmatprep.subr.bf16.mxu1 %v1873_v7  ;;  %v1913_v7 = vpack.c.bf16 %v988_v5, %v986_v4  ;;  %v1945_v5 = vpack.c.bf16 %v1020_v3, %v1018_v2  ;;  %v1060_v2 = vld [vmem:[#allocation14 + $0x5d8] sm:$0xff] }
 0x27d   :  { %1876 = vmatpush1.bf16.msra.mxu1 %v1875_v16  ;;  %v1915_v16 = vpack.c.bf16 %v987_v11, %v985_v9  ;;  %v1022_v9 = vld [vmem:[#allocation14 + $0x4a8] sm:$0xff]  ;;  %v1024_v11 = vld [vmem:[#allocation14 + $0x4b8] sm:$0xff] }
 0x27e   :  { %1878 = vmatprep.subr.bf16.mxu1 %v1877_v17  ;;  %v1917_v17 = vpack.c.bf16 %v992_v14, %v990_v12  ;;  %v1949_v14 = vpack.c.bf16 %v1024_v11, %v1022_v9  ;;  %v1312_v9 = vld [vmem:[%s2469_s7] ss:$0 sm:$0xff] }
 0x27f   :  { %v488_v11 = vadd.f32 %v2416_v8, %v1312_v9  ;;  %v912_v9 = vld [vmem:[#allocation14 + $0x138] sm:$0xff] }
 0x281   :  { %1880 = vmatpush1.bf16.msra.mxu1 %v1879_v22  ;;  %v1919_v22 = vpack.c.bf16 %v991_v19, %v989_v18  ;;  %v1026_v18 = vld [vmem:[#allocation14 + $0x4c8] sm:$0xff]  ;;  %v1028_v19 = vld [vmem:[#allocation14 + $0x4d8] sm:$0xff] }
 0x282   :  { %1882 = vmatprep.subr.bf16.mxu1 %v1881_v23  ;;  %v993_v23 = vld [vmem:[#allocation14 + $0x3c0] sm:$0xff]  ;;  %v1953_v21 = vpack.c.bf16 %v1028_v19, %v1026_v18  ;;  %v875_v18 = vld [vmem:[#allocation14 + $0x10] sm:$0xff]  ;;  %v878_v19 = vld [vmem:[#allocation14 + $0x28] sm:$0xff] }
 0x283   :  { %v1923_v30 = vpack.c.bf16 %v995_v62, %v993_v23  ;;  %v1027_v23 = vld [vmem:[#allocation14 + $0x4d0] sm:$0xff]  ;;  %v1032_v62 = vld [vmem:[#allocation14 + $0x4f8] sm:$0xff] }
 0x285   :  { %1884 = vmatpush1.bf16.msra.mxu1 %v1883_v27  ;;  %v998_v27 = vld [vmem:[#allocation14 + $0x3e8] sm:$0xff] }
 0x286   :  { %1886 = vmatprep.subr.bf16.mxu1 %v1885_v28  ;;  %v1000_v28 = vld [vmem:[#allocation14 + $0x3f8] sm:$0xff] }
 0x287   :  { %v1925_v32 = vpack.c.bf16 %v1000_v28, %v998_v27  ;;  %v1029_v27 = vld [vmem:[#allocation14 + $0x4e0] sm:$0xff]  ;;  %v1031_v28 = vld [vmem:[#allocation14 + $0x4f0] sm:$0xff] }
 0x289   :  { %1888 = vmatpush1.bf16.msra.mxu1 %v1887_v33  ;;  %v999_v33 = vld [vmem:[#allocation14 + $0x3f0] sm:$0xff] }
 0x28a   :  { %1890 = vmatprep.subr.bf16.mxu1 %v1889_v34  ;;  %v646_v34 = vld [vmem:[#allocation12 + $0x270] sm:$0xff]  ;;  %v1927_v37 = vpack.c.bf16 %v999_v33, %v997_v31  ;;  %v1959_v31 = vpack.c.bf16 %v1031_v28, %v1029_v27  ;;  %v1033_v33 = vld [vmem:[#allocation14 + $0x500] sm:$0xff]  ;;  %v884_v27 = vld [vmem:[#allocation14 + $0x58] sm:$0xff] }
 0x28b   :  { %v1799_v36 = vpack.c.bf16 %v647_v35, %v646_v34  ;;  %v1035_v34 = vld [vmem:[#allocation14 + $0x510] sm:$0xff]  ;;  %v1038_v35 = vld [vmem:[#allocation14 + $0x528] sm:$0xff] }
 0x28d   :  { %1892 = vmatpush1.bf16.msra.mxu1 %v1891_v39  ;;  %1800 = vmatpush3.bf16.msra.mxu0 %v1799_v36  ;;  %v1469_v39 = vpop.f32.mrb[5].mxu0  ;;  %v1040_v36 = vld [vmem:[#allocation14 + $0x538] sm:$0xff] }
 0x28e   :  { %1894 = vmatprep.subr.bf16.mxu1 %v1893_v40  ;;  %v2426_v40 = vadd.f32 %v1469_v39, %v1468_v38  ;;  %1802 = vmatprep.subr.bf16.mxu0 %v1801_v43  ;;  %v1965_v38 = vpack.c.bf16 %v1040_v36, %v1038_v35  ;;  %v1037_v39 = vld [vmem:[#allocation14 + $0x520] sm:$0xff]  ;;  %v1044_v43 = vld [vmem:[#allocation14 + $0x558] sm:$0xff]  ;;  %v887_v36 = vld [vmem:[#allocation14 + $0x70] sm:$0xff] }
 0x28f   :  { %v885_v35 = vld [vmem:[#allocation14 + $0x60] sm:$0xff] }
 0x291   :  { %1896 = vmatpush1.bf16.msra.mxu1 %v1895_v45  ;;  %v1004_v45 = vld [vmem:[#allocation14 + $0x418] sm:$0xff] }
 0x292   :  { %1898 = vmatprep.subr.bf16.mxu1 %v1897_v46  ;;  %v1929_v0 = vpack.c.bf16 %v1004_v45, %v1002_v44  ;;  %v1001_v46 = vld [vmem:[#allocation14 + $0x400] sm:$0xff]  ;;  %v1967_v44 = vpack.c.bf16 %v1039_v41, %v1037_v39  ;;  %v1969_v45 = vpack.c.bf16 %v1044_v43, %v1042_v42  ;;  %v1815_v39 = vpack.c.bf16 %v887_v36, %v885_v35  ;;  %v891_v42 = vld [vmem:[#allocation14 + $0x90] sm:$0xff]  ;;  %v894_v43 = vld [vmem:[#allocation14 + $0xa8] sm:$0xff] }
 0x293   :  { %v1931_v48 = vpack.c.bf16 %v1003_v47, %v1001_v46  ;;  %v1043_v46 = vld [vmem:[#allocation14 + $0x550] sm:$0xff]  ;;  %v1046_v47 = vld [vmem:[#allocation14 + $0x568] sm:$0xff]  ;;  %v889_v41 = vld [vmem:[#allocation14 + $0x80] sm:$0xff] }
 0x294   :  { %v926_v35 = vld [vmem:[#allocation14 + $0x1a8] sm:$0xff]  ;;  %v928_v36 = vld [vmem:[#allocation14 + $0x1b8] sm:$0xff] }
 0x295   :  { %1900 = vmatpush1.bf16.msra.mxu1 %v1899_v51  ;;  %v1933_v51 = vpack.c.bf16 %v1008_v50, %v1006_v49 }
 0x296   :  { %1902 = vmatprep.subr.bf16.mxu1 %v1901_v52  ;;  %v1005_v52 = vld [vmem:[#allocation14 + $0x420] sm:$0xff] }
 0x299   :  { %1904 = vmatpush1.bf16.msra.mxu1 %v1903_v1  ;;  %v1009_v1 = vld [vmem:[#allocation14 + $0x440] sm:$0xff] }
 0x29a   :  { %1906 = vmatprep.subr.bf16.mxu1 %v1905_v56  ;;  %v1011_v56 = vld [vmem:[#allocation14 + $0x450] sm:$0xff] }
 0x29b   :  { %v1939_v59 = vpack.c.bf16 %v1011_v56, %v1009_v1  ;;  %v1051_v1 = vld [vmem:[#allocation14 + $0x590] sm:$0xff]  ;;  %v1054_v56 = vld [vmem:[#allocation14 + $0x5a8] sm:$0xff] }
 0x29d   :  { %1908 = vmatpush1.bf16.msra.mxu1 %v1907_v61  ;;  %v1013_v61 = vld [vmem:[#allocation14 + $0x460] sm:$0xff] }
 0x29e   :  { %1910 = vmatprep.subr.bf16.mxu1 %v1909_v63  ;;  %v1015_v63 = vld [vmem:[#allocation14 + $0x470] sm:$0xff] }
 0x29f   :  { %v1943_v4 = vpack.c.bf16 %v1015_v63, %v1013_v61  ;;  %v1055_v61 = vld [vmem:[#allocation14 + $0x5b0] sm:$0xff]  ;;  %v1058_v63 = vld [vmem:[#allocation14 + $0x5c8] sm:$0xff] }
 0x2a1   :  { %1912 = vmatpush1.bf16.msra.mxu1 %v1911_v6  ;;  %v1017_v6 = vld [vmem:[#allocation14 + $0x480] sm:$0xff] }
 0x2a2   :  { %1914 = vmatprep.subr.bf16.mxu1 %v1913_v7  ;;  %v1019_v7 = vld [vmem:[#allocation14 + $0x490] sm:$0xff] }
 0x2a3   :  { %v1947_v12 = vpack.c.bf16 %v1019_v7, %v1017_v6  ;;  %v1059_v6 = vld [vmem:[#allocation14 + $0x5d0] sm:$0xff] }
 0x2a5   :  { %1916 = vmatpush1.bf16.msra.mxu1 %v1915_v16  ;;  %v1021_v16 = vld [vmem:[#allocation14 + $0x4a0] sm:$0xff] }
 0x2a6   :  { %1918 = vmatprep.subr.bf16.mxu1 %v1917_v17  ;;  %v1023_v17 = vld [vmem:[#allocation14 + $0x4b0] sm:$0xff] }
 0x2a7   :  { %v1951_v20 = vpack.c.bf16 %v1023_v17, %v1021_v16  ;;  %v873_v17 = vld [vmem:[#allocation14] sm:$0xff] }
 0x2a9   :  { %1920 = vmatpush1.bf16.msra.mxu1 %v1919_v22  ;;  %v1025_v22 = vld [vmem:[#allocation14 + $0x4c0] sm:$0xff] }
 0x2aa   :  { %1922 = vmatprep.subr.bf16.mxu1 %v1921_v24  ;;  %v1030_v24 = vld [vmem:[#allocation14 + $0x4e8] sm:$0xff]  ;;  %v1955_v25 = vpack.c.bf16 %v1027_v23, %v1025_v22  ;;  %v1803_v22 = vpack.c.bf16 %v875_v18, %v873_v17  ;;  %v911_v17 = vld [vmem:[#allocation14 + $0x130] sm:$0xff]  ;;  %v916_v18 = vld [vmem:[#allocation14 + $0x158] sm:$0xff] }
 0x2ab   :  { %v1957_v26 = vpack.c.bf16 %v1032_v62, %v1030_v24  ;;  %v877_v62 = vld [vmem:[#allocation14 + $0x20] sm:$0xff] }
 0x2ad   :  { %1924 = vmatpush1.bf16.msra.mxu1 %v1923_v30  ;;  %v1036_v30 = vld [vmem:[#allocation14 + $0x518] sm:$0xff] }
 0x2ae   :  { %1926 = vmatprep.subr.bf16.mxu1 %v1925_v32  ;;  %v1961_v32 = vpack.c.bf16 %v1036_v30, %v1034_v29  ;;  %v881_v29 = vld [vmem:[#allocation14 + $0x40] sm:$0xff]  ;;  %v883_v30 = vld [vmem:[#allocation14 + $0x50] sm:$0xff] }
 0x2b1   :  { %1928 = vmatpush1.bf16.msra.mxu1 %v1927_v37  ;;  %v1963_v37 = vpack.c.bf16 %v1035_v34, %v1033_v33  ;;  %v1811_v33 = vpack.c.bf16 %v883_v30, %v881_v29  ;;  %v922_v29 = vld [vmem:[#allocation14 + $0x188] sm:$0xff]  ;;  %v924_v30 = vld [vmem:[#allocation14 + $0x198] sm:$0xff] }
 0x2b2   :  { %1930 = vmatprep.subr.bf16.mxu1 %v1929_v0  ;;  %v1041_v0 = vld [vmem:[#allocation14 + $0x540] sm:$0xff] }
 0x2b3   :  { %v1971_v49 = vpack.c.bf16 %v1043_v46, %v1041_v0  ;;  %v893_v46 = vld [vmem:[#allocation14 + $0xa0] sm:$0xff] }
 0x2b4   :  { %1213 = vmatmul.mubr.f32.vlgmr.msra.gmra.mrb[6].mxu1 %v2418_v15  ;;  %v1007_v15 = vld [vmem:[#allocation14 + $0x430] sm:$0xff] }
 0x2b5   :  { %1932 = vmatpush1.bf16.msra.mxu1 %v1931_v48  ;;  %v1935_v53 = vpack.c.bf16 %v1007_v15, %v1005_v52  ;;  %v1048_v48 = vld [vmem:[#allocation14 + $0x578] sm:$0xff]  ;;  %v1047_v52 = vld [vmem:[#allocation14 + $0x570] sm:$0xff]  ;;  %v1050_v15 = vld [vmem:[#allocation14 + $0x588] sm:$0xff] }
 0x2b6   :  { %1934 = vmatprep.subr.bf16.mxu1 %v1933_v51  ;;  %v1973_v50 = vpack.c.bf16 %v1048_v48, %v1046_v47  ;;  %v1045_v51 = vld [vmem:[#allocation14 + $0x560] sm:$0xff]  ;;  %v895_v47 = vld [vmem:[#allocation14 + $0xb0] sm:$0xff]  ;;  %v898_v48 = vld [vmem:[#allocation14 + $0xc8] sm:$0xff] }
 0x2b7   :  { %v1975_v54 = vpack.c.bf16 %v1047_v52, %v1045_v51  ;;  %v897_v52 = vld [vmem:[#allocation14 + $0xc0] sm:$0xff] }
 0x2b9   :  { %1936 = vmatpush1.bf16.msra.mxu1 %v1935_v53  ;;  %v1052_v53 = vld [vmem:[#allocation14 + $0x598] sm:$0xff] }
 0x2ba   :  { %1938 = vmatprep.subr.bf16.mxu1 %v1937_v55  ;;  %v1977_v13 = vpack.c.bf16 %v1052_v53, %v1050_v15  ;;  %v1049_v55 = vld [vmem:[#allocation14 + $0x580] sm:$0xff]  ;;  %v899_v15 = vld [vmem:[#allocation14 + $0xd0] sm:$0xff]  ;;  %v902_v53 = vld [vmem:[#allocation14 + $0xe8] sm:$0xff] }
 0x2bb   :  { %v1979_v58 = vpack.c.bf16 %v1051_v1, %v1049_v55  ;;  %v1827_v55 = vpack.c.bf16 %v899_v15, %v897_v52  ;;  %v1062_v15 = vld [vmem:[#allocation14 + $0x5e8] sm:$0xff] }
 0x2bd   :  { %1940 = vmatpush1.bf16.msra.mxu1 %v1939_v59  ;;  %v1981_v59 = vpack.c.bf16 %v1056_v57, %v1054_v56  ;;  %v901_v56 = vld [vmem:[#allocation14 + $0xe0] sm:$0xff]  ;;  %v903_v57 = vld [vmem:[#allocation14 + $0xf0] sm:$0xff] }
 0x2be   :  { %1942 = vmatprep.subr.bf16.mxu1 %v1941_v60  ;;  %v1053_v60 = vld [vmem:[#allocation14 + $0x5a0] sm:$0xff] }
 0x2bf   :  { %v1983_v3 = vpack.c.bf16 %v1055_v61, %v1053_v60 }
 0x2c1   :  { %1944 = vmatpush1.bf16.msra.mxu1 %v1943_v4  ;;  %v1985_v4 = vpack.c.bf16 %v1060_v2, %v1058_v63  ;;  %v1831_v2 = vpack.c.bf16 %v903_v57, %v901_v56  ;;  %v2014_v56 = vld [vmem:[#allocation3] sm:$0xff] }
 0x2c2   :  { %1946 = vmatprep.subr.bf16.mxu1 %v1945_v5  ;;  %v1057_v5 = vld [vmem:[#allocation14 + $0x5c0] sm:$0xff] }
 0x2c3   :  { %v1987_v7 = vpack.c.bf16 %v1059_v6, %v1057_v5  ;;  %v905_v5 = vld [vmem:[#allocation14 + $0x100] sm:$0xff]  ;;  %v907_v6 = vld [vmem:[#allocation14 + $0x110] sm:$0xff] }
 0x2c5   :  { %1948 = vmatpush1.bf16.msra.mxu1 %v1947_v12 }
 0x2c6   :  { %1950 = vmatprep.subr.bf16.mxu1 %v1949_v14 }
 0x2c9   :  { %1952 = vmatpush1.bf16.msra.mxu1 %v1951_v20  ;;  %v880_v20 = vld [vmem:[#allocation14 + $0x38] sm:$0xff] }
 0x2ca   :  { %1954 = vmatprep.subr.bf16.mxu1 %v1953_v21  ;;  %v1805_v24 = vpack.c.bf16 %v880_v20, %v878_v19 }
 0x2cd   :  { %1956 = vmatpush1.bf16.msra.mxu1 %v1955_v25  ;;  %v879_v25 = vld [vmem:[#allocation14 + $0x30] sm:$0xff] }
 0x2ce   :  { %1958 = vmatprep.subr.bf16.mxu1 %v1957_v26  ;;  %v882_v26 = vld [vmem:[#allocation14 + $0x48] sm:$0xff]  ;;  %v1807_v8 = vpack.c.bf16 %v879_v25, %v877_v62  ;;  %v920_v25 = vld [vmem:[#allocation14 + $0x178] sm:$0xff] }
 0x2cf   :  { %v1809_v28 = vpack.c.bf16 %v884_v27, %v882_v26  ;;  %v918_v62 = vld [vmem:[#allocation14 + $0x168] sm:$0xff] }
 0x2d0   :  { %v1845_v27 = vpack.c.bf16 %v920_v25, %v918_v62 }
 0x2d1   :  { %1960 = vmatpush1.bf16.msra.mxu1 %v1959_v31  ;;  %v886_v31 = vld [vmem:[#allocation14 + $0x68] sm:$0xff] }
 0x2d2   :  { %1962 = vmatprep.subr.bf16.mxu1 %v1961_v32  ;;  %v888_v32 = vld [vmem:[#allocation14 + $0x78] sm:$0xff] }
 0x2d3   :  { %v1813_v34 = vpack.c.bf16 %v888_v32, %v886_v31  ;;  %v1849_v32 = vpack.c.bf16 %v924_v30, %v922_v29 }
 0x2d5   :  { %1964 = vmatpush1.bf16.msra.mxu1 %v1963_v37  ;;  %v890_v37 = vld [vmem:[#allocation14 + $0x88] sm:$0xff] }
 0x2d6   :  { %1966 = vmatprep.subr.bf16.mxu1 %v1965_v38  ;;  %v892_v38 = vld [vmem:[#allocation14 + $0x98] sm:$0xff] }
 0x2d9   :  { %1968 = vmatpush1.bf16.msra.mxu1 %v1967_v44  ;;  %v896_v44 = vld [vmem:[#allocation14 + $0xb8] sm:$0xff] }
 0x2da   :  { %1970 = vmatprep.subr.bf16.mxu1 %v1969_v45  ;;  %v1819_v45 = vpack.c.bf16 %v891_v42, %v889_v41  ;;  %v1821_v0 = vpack.c.bf16 %v896_v44, %v894_v43  ;;  %v930_v41 = vld [vmem:[#allocation14 + $0x1c8] sm:$0xff]  ;;  %v932_v42 = vld [vmem:[#allocation14 + $0x1d8] sm:$0xff] }
 0x2db   :  { %v1857_v44 = vpack.c.bf16 %v932_v42, %v930_v41 }
 0x2dd   :  { %1972 = vmatpush1.bf16.msra.mxu1 %v1971_v49  ;;  %v900_v49 = vld [vmem:[#allocation14 + $0xd8] sm:$0xff] }
 0x2de   :  { %1974 = vmatprep.subr.bf16.mxu1 %v1973_v50  ;;  %v1823_v50 = vpack.c.bf16 %v895_v47, %v893_v46  ;;  %v1825_v51 = vpack.c.bf16 %v900_v49, %v898_v48  ;;  %v934_v46 = vld [vmem:[#allocation14 + $0x1e8] sm:$0xff]  ;;  %v936_v47 = vld [vmem:[#allocation14 + $0x1f8] sm:$0xff] }
 0x2df   :  { %v1861_v49 = vpack.c.bf16 %v936_v47, %v934_v46 }
 0x2e1   :  { %1976 = vmatpush1.bf16.msra.mxu1 %v1975_v54  ;;  %v904_v54 = vld [vmem:[#allocation14 + $0xf8] sm:$0xff] }
 0x2e2   :  { %1978 = vmatprep.subr.bf16.mxu1 %v1977_v13  ;;  %v1313_v13 = vld [vmem:[%s2471_s9] ss:$0 sm:$0xff]  ;;  %v1829_v1 = vpack.c.bf16 %v904_v54, %v902_v53  ;;  %v1064_v53 = vld [vmem:[#allocation14 + $0x5f8] sm:$0xff] }
 0x2e3   :  { %v722_v60 = vadd.f32 %v2426_v40, %v1313_v13  ;;  %v914_v40 = vld [vmem:[#allocation14 + $0x148] sm:$0xff]  ;;  %v1989_v54 = vpack.c.bf16 %v1064_v53, %v1062_v15  ;;  %v1061_v13 = vld [vmem:[#allocation14 + $0x5e0] sm:$0xff] }
 0x2e4   :  { %v1841_v20 = vpack.c.bf16 %v916_v18, %v914_v40 }
 0x2e5   :  { %1980 = vmatpush1.bf16.msra.mxu1 %v1979_v58  ;;  %v906_v58 = vld [vmem:[#allocation14 + $0x108] sm:$0xff] }
 0x2e6   :  { %1982 = vmatprep.subr.bf16.mxu1 %v1981_v59  ;;  %v908_v59 = vld [vmem:[#allocation14 + $0x118] sm:$0xff] }
 0x2e9   :  { %1984 = vmatpush1.bf16.msra.mxu1 %v1983_v3 }
 0x2ea   :  { %1986 = vmatprep.subr.bf16.mxu1 %v1985_v4  ;;  %v1833_v4 = vpack.c.bf16 %v908_v59, %v906_v58 }
 0x2ed   :  { %1988 = vmatpush1.bf16.msra.mxu1 %v1987_v7  ;;  %v910_v7 = vld [vmem:[#allocation14 + $0x128] sm:$0xff] }
 0x2ee   :  { %1990 = vmatprep.subr.bf16.mxu1 %v1989_v54 }
 0x327   :  { %v1433_v12 = vpop.f32.mrb[2].mxu1 }
 0x328   :  { %v1434_v14 = vpop.f32.mrb[3].mxu1 }
 0x329   :  { %v1435_v16 = vadd.f32 %v1434_v14, %v1433_v12  ;;  %v1835_v12 = vpack.c.bf16 %v907_v6, %v905_v5  ;;  %v1837_v14 = vpack.c.bf16 %v912_v9, %v910_v7  ;;  %v1065_v5 = vld [vmem:[%s2473_s11] sm:$0x3] }
 0x32b   :  { %v2432_v21 = vadd.f32 %v1435_v16, %v488_v11  ;;  %v909_v16 = vld [vmem:[#allocation14 + $0x120] sm:$0xff] }
 0x32c   :  { %v1839_v19 = vpack.c.bf16 %v911_v17, %v909_v16 }
 0x32d   :  { %v561_v23 = vmax.f32 %v2432_v21, 0.0 }
 0x32f   :  { %1591 = vmatmul.mubr.f32.vlgmr.msra.gmra.mrb[6].mxu0 %v561_v23 }
 0x330   :  { %1141 = vmatprep.mubr.f32.mxu0 %v2393_v10  ;;  %1804 = vmatpush1.bf16.msra.mxu0 %v1803_v22  ;;  %v1817_v10 = vpack.c.bf16 %v892_v38, %v890_v37  ;;  %v913_v22 = vld [vmem:[#allocation14 + $0x140] sm:$0xff]  ;;  %v1853_v38 = vpack.c.bf16 %v928_v36, %v926_v35 }
 0x331   :  { %1806 = vmatprep.subr.bf16.mxu0 %v1805_v24  ;;  %v915_v24 = vld [vmem:[#allocation14 + $0x150] sm:$0xff] }
 0x332   :  { %v1843_v26 = vpack.c.bf16 %v915_v24, %v913_v22 }
 0x334   :  { %1808 = vmatpush1.bf16.msra.mxu0 %v1807_v8  ;;  %v917_v8 = vld [vmem:[#allocation14 + $0x160] sm:$0xff] }
 0x335   :  { %1810 = vmatprep.subr.bf16.mxu0 %v1809_v28  ;;  %v919_v28 = vld [vmem:[#allocation14 + $0x170] sm:$0xff] }
 0x336   :  { %v1847_v31 = vpack.c.bf16 %v919_v28, %v917_v8 }
 0x338   :  { %1812 = vmatpush1.bf16.msra.mxu0 %v1811_v33  ;;  %v921_v33 = vld [vmem:[#allocation14 + $0x180] sm:$0xff] }
 0x339   :  { %1814 = vmatprep.subr.bf16.mxu0 %v1813_v34  ;;  %v923_v34 = vld [vmem:[#allocation14 + $0x190] sm:$0xff] }
 0x33a   :  { %v1851_v37 = vpack.c.bf16 %v923_v34, %v921_v33 }
 0x33c   :  { %1816 = vmatpush1.bf16.msra.mxu0 %v1815_v39  ;;  %v925_v39 = vld [vmem:[#allocation14 + $0x1a0] sm:$0xff] }
 0x33d   :  { %1818 = vmatprep.subr.bf16.mxu0 %v1817_v10  ;;  %v927_v10 = vld [vmem:[#allocation14 + $0x1b0] sm:$0xff] }
 0x33e   :  { %v1855_v43 = vpack.c.bf16 %v927_v10, %v925_v39 }
 0x340   :  { %1820 = vmatpush1.bf16.msra.mxu0 %v1819_v45  ;;  %v929_v45 = vld [vmem:[#allocation14 + $0x1c0] sm:$0xff] }
 0x341   :  { %1822 = vmatprep.subr.bf16.mxu0 %v1821_v0  ;;  %v931_v0 = vld [vmem:[#allocation14 + $0x1d0] sm:$0xff] }
 0x342   :  { %v1859_v48 = vpack.c.bf16 %v931_v0, %v929_v45 }
 0x344   :  { %1824 = vmatpush1.bf16.msra.mxu0 %v1823_v50  ;;  %v933_v50 = vld [vmem:[#allocation14 + $0x1e0] sm:$0xff] }
 0x345   :  { %1826 = vmatprep.subr.bf16.mxu0 %v1825_v51  ;;  %v935_v51 = vld [vmem:[#allocation14 + $0x1f0] sm:$0xff] }
 0x346   :  { %v1863_v52 = vpack.c.bf16 %v935_v51, %v933_v50 }
 0x347   :  { %v1503_v61 = vpop.f32.mrb[4].mxu1 }
 0x348   :  { %v1504_v63 = vpop.f32.mrb[5].mxu1  ;;  %1828 = vmatpush1.bf16.msra.mxu0 %v1827_v55  ;;  %v1063_v55 = vld [vmem:[#allocation14 + $0x5f0] sm:$0xff] }
 0x349   :  { %v1505_v3 = vadd.f32 %v1504_v63, %v1503_v61  ;;  %1830 = vmatprep.subr.bf16.mxu0 %v1829_v1  ;;  %v1991_v1 = vpack.c.bf16 %v1063_v55, %v1061_v13 }
 0x34b   :  { %v2442_v11 = vadd.f32 %v1505_v3, %v722_v60  ;;  %1992 = vmatpush1.bf16.msra.mxu1 %v1991_v1 }
 0x34c   :  { %1832 = vmatpush1.bf16.msra.mxu0 %v1831_v2  ;;  %v1067_v2 = vlaneseq }
 0x34d   :  { %1834 = vmatprep.subr.bf16.mxu0 %v1833_v4 }
 0x34e   :  { %v1068_v3 = vshrl.u32 %v1067_v2, 7 }
 0x350   :  { %1836 = vmatpush1.bf16.msra.mxu0 %v1835_v12  ;;  %v1069_v4 = vsub.s32 0, %v1068_v3  ;;  %v1073_v6 = vsub.s32 1, %v1068_v3 }
 0x351   :  { %1838 = vmatprep.subr.bf16.mxu0 %v1837_v14 }
 0x352   :  { %v1070_v7 = vrot.slane %v1065_v5, %v1069_v4  ;;  %v1074_v9 = vrot.slane %v1065_v5, %v1073_v6 }
 0x354   :  { %1840 = vmatpush1.bf16.msra.mxu0 %v1839_v19 }
 0x355   :  { %1842 = vmatprep.subr.bf16.mxu0 %v1841_v20 }
 0x358   :  { %1844 = vmatpush1.bf16.msra.mxu0 %v1843_v26 }
 0x359   :  { %1846 = vmatprep.subr.bf16.mxu0 %v1845_v27 }
 0x35c   :  { %1848 = vmatpush1.bf16.msra.mxu0 %v1847_v31 }
 0x35d   :  { %1850 = vmatprep.subr.bf16.mxu0 %v1849_v32 }
 0x360   :  { %1852 = vmatpush1.bf16.msra.mxu0 %v1851_v37 }
 0x361   :  { %1854 = vmatprep.subr.bf16.mxu0 %v1853_v38 }
 0x364   :  { %1856 = vmatpush1.bf16.msra.mxu0 %v1855_v43 }
 0x365   :  { %1858 = vmatprep.subr.bf16.mxu0 %v1857_v44 }
 0x368   :  { %1860 = vmatpush1.bf16.msra.mxu0 %v1859_v48 }
 0x369   :  { %1862 = vmatprep.subr.bf16.mxu0 %v1861_v49 }
 0x36c   :  { %1864 = vmatpush1.bf16.msra.mxu0 %v1863_v52 }
 0x36f   :  { %1142 = vmatmul.mubr.f32.vlgmr.msra.gmra.mrb[8].mxu0 %v2014_v56 }
 0x402   :  { %v861_v57 = vpop.f32.mrb[6].mxu0 }
 0x403   :  { %v862_v58 = vadd.f32 %v861_v57, %v2442_v11  ;;  %v1592_v59 = vpop.f32.mrb[7].mxu0 }
 0x405   :  { %v865_v60 = vmax.f32 %v862_v58, 0.0 }
 0x407   :  { %1283 = vmatprep.mubr.f32.mxu1 %v865_v60 }
 0x408   :  { %1284 = vmatmul.mubr.f32.vlgmr.msra.gmra.mrb[6].mxu1 %v561_v23 }
 0x442   :  { %v1143_v61 = vpop.f32.mrb[8].mxu0 }
 0x443   :  { %v1145_v63 = vpop.f32.mrb[9].mxu0  ;;  %v1144_v12 = vadd.f32 %v1143_v61, %v1070_v7 }
 0x444   :  { %v1146_v11 = vadd.f32 %v1145_v63, %v1074_v9 }
 0x4db   :  { %v1285_v14 = vpop.f32.mrb[6].mxu1 }
 0x4dc   :  { %v1994_v16 = vadd.f32 %v1285_v14, %v1144_v12  ;;  %v1287_v21 = vpop.f32.mrb[7].mxu1 }
 0x4dd   :  { %v1996_v23 = vadd.f32 %v1287_v21, %v1146_v11 }
 0x4de   :  { %1290 = vst [vmem:[#allocation15] sm:$0xff] %v1994_v16 }
 0x4df   :  { %1291 = vst [vmem:[#allocation15 + $0x8] sm:$0xff] %v1996_v23 }
 0x4e0   :  { %2180 = shalt.err (!%p2177_p4)
}
 0x4e1   :  { %s2181_s2 = scalar_lea.hbm %s2474_s12, 256 }
 0x4e2   :  { %p2182_p5 = scmp.ne.s32.totalorder %s2474_s12, %s2181_s2  ;;  %p2185_p6 = scmp.lt.u32.totalorder %s2181_s2, %s2474_s12 }
 0x4e4   :  { %p2187_p7 = pnand %p2185_p6, %p2182_p5 }
 0x4e6   :  { %2190 = shalt.err (!%p2187_p7)
}
 0x4e7   :  { %1301 = dma.vmem_to_hbm [thread:$0]  %s1299_s17, 256, %s2474_s12, [#allocation5]  }
 0x4e8   :  { %2199 = dma.done.wait [#allocation5], 256  }
 0x4e9   :  { %2200 = vsyncadd [#allocation5], 4294967040 }
 0x4ea   :  { %1305 = vsyncpa [#allocation4], 1 }
 0x4eb   :  { %1306 = vsyncpa [#allocation7], 1 }
 0x4ec   :  { %1307 = vsyncpa [#allocation10], 1 }
 0x4ed   :  { %1308 = vsyncpa [#allocation13], 1 }
 0x4ee   :  { %1309 = vsyncpa [#allocation5], 1 }

</bundles_post_ra>
